<compile_context>
chip_gen: v7x
topology: tpu7x:2x2x1
jax: 0.10.0
libtpu: 0.0.40
codegen_flags: <defaults>
</compile_context>

<pallas_src>
import math

import jax
import jax.numpy as jnp
import numpy as np
from jax import lax
from jax.experimental import pallas as pl
from jax.experimental.pallas import tpu as pltpu

_INV_SQRT2 = 0.7071067811865476
_GEN_EPS = 1e-7     # GENConv eps
_BN_EPS = 1e-5      # BatchNorm1d eps
_LN_EPS = 1e-5      # LayerNorm eps
_NEG_BIG = -1e30    # finite "-inf" for the running softmax max


def _round_up(a, b):
    return (a + b - 1) // b * b


# ---------------------------------------------------------------------------
# Kernel A: GENConv aggregation + node MLP + LayerNorm + ELU
#           (+ hoisted edge-MLP projections p1/p2)
# Grid: edge tiles (sequential / "arbitrary"), [N,D] accumulators in scratch.
# ---------------------------------------------------------------------------
def _make_node_kernel(*, N, D, TE, E, edge_dim):
    def kernel(src_ref, dst_ref,                                  # scalar prefetch (SMEM)
               x_ref, ea_ref, t_ref,
               w_src_ref, b_src_ref, w_edge_ref, b_edge_ref, w_dst_ref, b_dst_ref,
               w1_ref, b1_ref, bn_g_ref, bn_b_ref, bn_rm_ref, bn_rv_ref,
               w2_ref, b2_ref, ln_g_ref, ln_b_ref,
               we1_ref, we2_ref, be_ref,
               out_x_ref, p1_ref, p2_ref,
               xsrc_s, elin_s, m_s, den_s, num_s):
        f32 = jnp.float32
        i = pl.program_id(0)

        def dot(a, b):  # default MXU precision, f32 accumulate (no HIGHEST)
            return jnp.dot(a, b, preferred_element_type=f32)

        # ---- one-time init (scratch persists across grid steps) -----------
        @pl.when(i == 0)
        def _init():
            xsrc_s[...] = dot(x_ref[...], w_src_ref[...]) + b_src_ref[...]   # lin_src(x)
            m_s[...] = jnp.full((N, D), _NEG_BIG, f32)
            den_s[...] = jnp.zeros((N, D), f32)
            num_s[...] = jnp.zeros((N, D), f32)

        # ---- lin_edge for this edge tile: K = edge_dim (=2) -> VPU FMAs ----
        ea = ea_ref[...]                                           # [TE, edge_dim]
        e_lin = jnp.zeros((TE, D), f32) + b_edge_ref[...]
        for k in range(edge_dim):                                  # static, tiny
            e_lin = e_lin + ea[:, k:k + 1] * w_edge_ref[k:k + 1, :]
        elin_s[...] = e_lin

        # ---- online per-destination, per-feature softmax aggregation ------
        t = t_ref[0, 0]
        base = i * TE

        def edge_body(j, carry):
            @pl.when(base + j < E)        # mask tail padding of the last tile
            def _():
                s = src_ref[base + j]
                d = dst_ref[base + j]
                xs = xsrc_s[pl.ds(s, 1), :]                                   # gather x_src[src]
                msg = jnp.maximum(xs + elin_s[pl.ds(j, 1), :], 0.0) + _GEN_EPS
                logit = msg * t
                m_old = m_s[pl.ds(d, 1), :]
                m_new = jnp.maximum(m_old, logit)
                scale = jnp.exp(m_old - m_new)
                p = jnp.exp(logit - m_new)
                den_s[pl.ds(d, 1), :] = den_s[pl.ds(d, 1), :] * scale + p
                num_s[pl.ds(d, 1), :] = num_s[pl.ds(d, 1), :] * scale + p * msg
                m_s[pl.ds(d, 1), :] = m_new
            return carry

        lax.fori_loop(0, TE, edge_body, 0)

        # ---- finalize on the last edge tile --------------------------------
        @pl.when(i == pl.num_programs(0) - 1)
        def _finalize():
            den = den_s[...]
            agg = jnp.where(den > 0.0, num_s[...] / jnp.maximum(den, 1e-16), 0.0)
            h = agg + dot(x_ref[...], w_dst_ref[...]) + b_dst_ref[...]        # + lin_dst(x)

            # GENConv MLP: Linear(D,2D) -> BatchNorm(eval) -> ReLU -> Linear(2D,D)
            h1 = dot(h, w1_ref[...]) + b1_ref[...]
            h1 = (h1 - bn_rm_ref[...]) * lax.rsqrt(bn_rv_ref[...] + _BN_EPS)
            h1 = h1 * bn_g_ref[...] + bn_b_ref[...]
            h1 = jnp.maximum(h1, 0.0)
            conv = dot(h1, w2_ref[...]) + b2_ref[...]

            # LayerNorm + ELU
            mu = jnp.mean(conv, axis=-1, keepdims=True)
            var = jnp.mean((conv - mu) ** 2, axis=-1, keepdims=True)
            nx = (conv - mu) * lax.rsqrt(var + _LN_EPS)
            nx = nx * ln_g_ref[...] + ln_b_ref[...]
            out_x = jnp.where(nx > 0.0, nx, jnp.exp(jnp.minimum(nx, 0.0)) - 1.0)
            # TODO(synk): Dropout(0.2) is identity here (eval mode); training PRNG omitted.
            out_x_ref[...] = out_x

            # hoisted edge-MLP projections: cat([xr,xc]) @ W == xr@W1 + xc@W2
            p1_ref[...] = dot(out_x, we1_ref[...]) + be_ref[...]
            p2_ref[...] = dot(out_x, we2_ref[...])

    return kernel


# ---------------------------------------------------------------------------
# Kernel B: edge MLP.  Grid over independent edge tiles ("parallel").
# Per edge: eh = p1[src] + p2[dst]; then GELU + LayerNorm vectorised per tile.
# ---------------------------------------------------------------------------
def _make_edge_kernel(*, TE):
    def kernel(src_ref, dst_ref,                                  # scalar prefetch (SMEM)
               p1_ref, p2_ref, lng_ref, lnb_ref,
               out_e_ref, eh_s):
        i = pl.program_id(0)
        base = i * TE

        def gather_body(j, carry):
            s = src_ref[base + j]
            d = dst_ref[base + j]
            eh_s[pl.ds(j, 1), :] = p1_ref[pl.ds(s, 1), :] + p2_ref[pl.ds(d, 1), :]
            return carry

        lax.fori_loop(0, TE, gather_body, 0)

        eh = eh_s[...]
        eh = 0.5 * eh * (1.0 + lax.erf(eh * _INV_SQRT2))           # exact GELU
        mu = jnp.mean(eh, axis=-1, keepdims=True)
        var = jnp.mean((eh - mu) ** 2, axis=-1, keepdims=True)
        oe = (eh - mu) * lax.rsqrt(var + _LN_EPS)
        out_e_ref[...] = oe * lng_ref[...] + lnb_ref[...]

    return kernel


# ---------------------------------------------------------------------------
# Wrapper
# ---------------------------------------------------------------------------
def multi_head_gen_layer(x, edge_index, edge_attr, p, *, edge_tile=128):
    N, in_dim = x.shape
    E = edge_index.shape[1]
    edge_dim = edge_attr.shape[1]
    D = p["w_src"].shape[1]

    TE = min(edge_tile, _round_up(E, 8))
    E_pad = _round_up(E, TE)
    n_blocks = E_pad // TE
    pad = E_pad - E

    src = edge_index[0].astype(jnp.int32)
    dst = edge_index[1].astype(jnp.int32)
    if pad:
        src = jnp.pad(src, (0, pad))
        dst = jnp.pad(dst, (0, pad))
        edge_attr = jnp.pad(edge_attr, ((0, pad), (0, 0)))

    def full2(a):  # whole-array (resident) 2-D block
        return pl.BlockSpec(a.shape, lambda i, *_: (0, 0))

    node_kernel = _make_node_kernel(N=N, D=D, TE=TE, E=E, edge_dim=edge_dim)
    node_inputs = (
        x, edge_attr, p["t"],
        p["w_src"], p["b_src"], p["w_edge"], p["b_edge"], p["w_dst"], p["b_dst"],
        p["w1"], p["b1"], p["bn_g"], p["bn_b"], p["bn_rm"], p["bn_rv"],
        p["w2"], p["b2"], p["ln_g"], p["ln_b"],
        p["we1"], p["we2"], p["be"],
    )
    node_in_specs = [
        full2(x),                                                 # x (full, resident)
        pl.BlockSpec((TE, edge_dim), lambda i, *_: (i, 0)),       # edge_attr tile
        pl.BlockSpec(memory_space=pltpu.MemorySpace.SMEM),        # temperature scalar
    ] + [full2(a) for a in node_inputs[3:]]                       # weights (resident)

    out_x, p1, p2 = pl.pallas_call(
        node_kernel,
        out_shape=(
            jax.ShapeDtypeStruct((N, D), jnp.float32),
            jax.ShapeDtypeStruct((N, D), jnp.float32),
            jax.ShapeDtypeStruct((N, D), jnp.float32),
        ),
        grid_spec=pltpu.PrefetchScalarGridSpec(
            num_scalar_prefetch=2,                 # src, dst indices -> SMEM
            grid=(n_blocks,),
            in_specs=node_in_specs,
            out_specs=(
                pl.BlockSpec((N, D), lambda i, *_: (0, 0)),
                pl.BlockSpec((N, D), lambda i, *_: (0, 0)),
                pl.BlockSpec((N, D), lambda i, *_: (0, 0)),
            ),
            scratch_shapes=[
                pltpu.VMEM((N, D), jnp.float32),   # lin_src(x)
                pltpu.VMEM((TE, D), jnp.float32),  # lin_edge(edge_attr) tile
                pltpu.VMEM((N, D), jnp.float32),   # running max
                pltpu.VMEM((N, D), jnp.float32),   # running denominator
                pltpu.VMEM((N, D), jnp.float32),   # running numerator
            ],
        ),
        compiler_params=pltpu.CompilerParams(
            dimension_semantics=("arbitrary",),    # sequential accumulation over edge tiles
            vmem_limit_bytes=32 * 1024 * 1024,
        ),
    )(src, dst, *node_inputs)

    edge_kernel = _make_edge_kernel(TE=TE)
    out_e = pl.pallas_call(
        edge_kernel,
        out_shape=jax.ShapeDtypeStruct((E_pad, D), jnp.float32),
        grid_spec=pltpu.PrefetchScalarGridSpec(
            num_scalar_prefetch=2,
            grid=(n_blocks,),
            in_specs=[
                pl.BlockSpec((N, D), lambda i, *_: (0, 0)),       # p1 (resident)
                pl.BlockSpec((N, D), lambda i, *_: (0, 0)),       # p2 (resident)
                pl.BlockSpec((1, D), lambda i, *_: (0, 0)),       # LN gamma
                pl.BlockSpec((1, D), lambda i, *_: (0, 0)),       # LN beta
            ],
            out_specs=pl.BlockSpec((TE, D), lambda i, *_: (i, 0)),
            scratch_shapes=[pltpu.VMEM((TE, D), jnp.float32)],
        ),
        compiler_params=pltpu.CompilerParams(
            dimension_semantics=("parallel",),     # independent edge tiles -> megacore
            vmem_limit_bytes=32 * 1024 * 1024,
        ),
    )(src, dst, p1, p2, p["lne_g"], p["lne_b"])

    return out_x, out_e[:E]


# ---------------------------------------------------------------------------
# Parameters + pure-JAX reference
# ---------------------------------------------------------------------------
def init_params(key, in_dim, out_dim, edge_dim):
    ks = jax.random.split(key, 6)

    def lin(k, fi, fo):
        kw, kb = jax.random.split(k)
        bnd = 1.0 / math.sqrt(fi)
        w = jax.random.uniform(kw, (fi, fo), jnp.float32, -bnd, bnd)
        b = jax.random.uniform(kb, (1, fo), jnp.float32, -bnd, bnd)
        return w, b

    w_src, b_src = lin(ks[0], in_dim, out_dim)
    w_edge, b_edge = lin(ks[1], edge_dim, out_dim)
    w_dst, b_dst = lin(ks[2], in_dim, out_dim)
    w1, b1 = lin(ks[3], out_dim, 2 * out_dim)
    w2, b2 = lin(ks[4], 2 * out_dim, out_dim)
    we_full, be = lin(ks[5], 2 * out_dim, out_dim)

    return dict(
        w_src=w_src, b_src=b_src, w_edge=w_edge, b_edge=b_edge,
        w_dst=w_dst, b_dst=b_dst,
        t=jnp.ones((1, 1), jnp.float32),                          # learn_t init 1.0
        w1=w1, b1=b1,
        bn_g=jnp.ones((1, 2 * out_dim), jnp.float32),
        bn_b=jnp.zeros((1, 2 * out_dim), jnp.float32),
        bn_rm=jnp.zeros((1, 2 * out_dim), jnp.float32),           # BN eval stats
        bn_rv=jnp.ones((1, 2 * out_dim), jnp.float32),
        w2=w2, b2=b2,
        ln_g=jnp.ones((1, out_dim), jnp.float32),
        ln_b=jnp.zeros((1, out_dim), jnp.float32),
        we1=we_full[:out_dim], we2=we_full[out_dim:], be=be,
        lne_g=jnp.ones((1, out_dim), jnp.float32),
        lne_b=jnp.zeros((1, out_dim), jnp.float32),
    )


def reference(x, edge_index, edge_attr, p):
    """Pure-JAX mirror (segment ops, Precision.HIGHEST ground truth)."""
    hp = jax.lax.Precision.HIGHEST

    def dot(a, b):
        return jnp.dot(a, b, precision=hp)

    src, dst = edge_index[0], edge_index[1]
    N = x.shape[0]
    x_src = dot(x, p["w_src"]) + p["b_src"][0]
    e_lin = dot(edge_attr, p["w_edge"]) + p["b_edge"][0]
    msg = jax.nn.relu(x_src[src] + e_lin) + _GEN_EPS
    logits = msg * p["t"][0, 0]
    seg_max = jax.ops.segment_max(logits, dst, num_segments=N)
    seg_max = jnp.where(jnp.isfinite(seg_max), seg_max, 0.0)
    ex = jnp.exp(logits - seg_max[dst])
    den = jax.ops.segment_sum(ex, dst, num_segments=N)
    alpha = ex / jnp.maximum(den[dst], 1e-16)
    agg = jax.ops.segment_sum(msg * alpha, dst, num_segments=N)
    h = agg + dot(x, p["w_dst"]) + p["b_dst"][0]
    h1 = dot(h, p["w1"]) + p["b1"][0]
    h1 = (h1 - p["bn_rm"][0]) / jnp.sqrt(p["bn_rv"][0] + _BN_EPS)
    h1 = h1 * p["bn_g"][0] + p["bn_b"][0]
    h1 = jax.nn.relu(h1)
    conv_out = dot(h1, p["w2"]) + p["b2"][0]
    mu = conv_out.mean(-1, keepdims=True)
    var = ((conv_out - mu) ** 2).mean(-1, keepdims=True)
    nx = (conv_out - mu) / jnp.sqrt(var + _LN_EPS) * p["ln_g"][0] + p["ln_b"][0]
    out_x = jnp.where(nx > 0, nx, jnp.expm1(jnp.minimum(nx, 0.0)))
    ef = jnp.concatenate([out_x[src], out_x[dst]], axis=1)
    we = jnp.concatenate([p["we1"], p["we2"]], axis=0)
    eh = dot(ef, we) + p["be"][0]
    eh = jax.nn.gelu(eh, approximate=False)
    mu_e = eh.mean(-1, keepdims=True)
    var_e = ((eh - mu_e) ** 2).mean(-1, keepdims=True)
    out_e = (eh - mu_e) / jnp.sqrt(var_e + _LN_EPS) * p["lne_g"][0] + p["lne_b"][0]
    return out_x, out_e


if __name__ == "__main__":
    # small but lane-dense shapes: out_dim = 128 fills the 128-wide lane axis.
    N, E = 64, 200
    IN_DIM, OUT_DIM, EDGE_DIM = 64, 128, 2

    key = jax.random.PRNGKey(0)
    kx, ke, ks, kp = jax.random.split(key, 4)
    x = jax.random.normal(kx, (N, IN_DIM), jnp.float32)
    edge_attr = jax.random.normal(ke, (E, EDGE_DIM), jnp.float32)
    dst = jnp.arange(E, dtype=jnp.int32) % N          # every node has incoming edges
    src = jax.random.randint(ks, (E,), 0, N, dtype=jnp.int32)
    edge_index = jnp.stack([src, dst], axis=0)

    params = init_params(kp, IN_DIM, OUT_DIM, EDGE_DIM)

    out_x, out_e = multi_head_gen_layer(x, edge_index, edge_attr, params)
    jax.block_until_ready((out_x, out_e))

    ref_x, ref_e = reference(x, edge_index, edge_attr, params)
    assert out_x.shape == (N, OUT_DIM) and out_e.shape == (E, OUT_DIM)
    # Kernel matmuls run at default MXU precision (bf16 passes) vs. an f32 HIGHEST
    # reference, so allow a few 1e-2 of slack on the LayerNorm-normalised outputs.
    assert np.allclose(np.asarray(out_x), np.asarray(ref_x), atol=5e-2, rtol=5e-2)
    assert np.allclose(np.asarray(out_e), np.asarray(ref_e), atol=5e-2, rtol=5e-2)
    print("KERNEL_OK")
</pallas_src>

<mosaic_0001>
module attributes {stable_mosaic.version = 11 : i64} {
  func.func @kernel(%arg0: i32, %arg1: memref<256xi32, #tpu.memory_space<smem>>, %arg2: memref<256xi32, #tpu.memory_space<smem>>, %arg3: memref<64x64xf32, #tpu.memory_space<vmem>>, %arg4: memref<128x2xf32, #tpu.memory_space<vmem>>, %arg5: memref<1x1xf32, #tpu.memory_space<smem>>, %arg6: memref<64x128xf32, #tpu.memory_space<vmem>>, %arg7: memref<1x128xf32, #tpu.memory_space<vmem>>, %arg8: memref<2x128xf32, #tpu.memory_space<vmem>>, %arg9: memref<1x128xf32, #tpu.memory_space<vmem>>, %arg10: memref<64x128xf32, #tpu.memory_space<vmem>>, %arg11: memref<1x128xf32, #tpu.memory_space<vmem>>, %arg12: memref<128x256xf32, #tpu.memory_space<vmem>>, %arg13: memref<1x256xf32, #tpu.memory_space<vmem>>, %arg14: memref<1x256xf32, #tpu.memory_space<vmem>>, %arg15: memref<1x256xf32, #tpu.memory_space<vmem>>, %arg16: memref<1x256xf32, #tpu.memory_space<vmem>>, %arg17: memref<1x256xf32, #tpu.memory_space<vmem>>, %arg18: memref<256x128xf32, #tpu.memory_space<vmem>>, %arg19: memref<1x128xf32, #tpu.memory_space<vmem>>, %arg20: memref<1x128xf32, #tpu.memory_space<vmem>>, %arg21: memref<1x128xf32, #tpu.memory_space<vmem>>, %arg22: memref<128x128xf32, #tpu.memory_space<vmem>>, %arg23: memref<128x128xf32, #tpu.memory_space<vmem>>, %arg24: memref<1x128xf32, #tpu.memory_space<vmem>>, %arg25: memref<64x128xf32, #tpu.memory_space<vmem>>, %arg26: memref<64x128xf32, #tpu.memory_space<vmem>>, %arg27: memref<64x128xf32, #tpu.memory_space<vmem>>, %arg28: memref<64x128xf32, #tpu.memory_space<vmem>>, %arg29: memref<128x128xf32, #tpu.memory_space<vmem>>, %arg30: memref<64x128xf32, #tpu.memory_space<vmem>>, %arg31: memref<64x128xf32, #tpu.memory_space<vmem>>, %arg32: memref<64x128xf32, #tpu.memory_space<vmem>>) attributes {dimension_semantics = [#tpu.dimension_semantics<arbitrary>], iteration_bounds = array<i64: 2>, scalar_prefetch = 2 : i64, scratch_operands = 5 : i64, tpu.core_type = #tpu.core_type<tc>, window_params = [{pipeline_mode = #tpu.pipeline_mode<synchronous>, transform_indices = @transform_0, window_bounds = array<i64: 64, 64>}, {transform_indices = @transform_1, window_bounds = array<i64: 128, 2>}, {transform_indices = @transform_2, window_bounds = array<i64: 1, 1>}, {pipeline_mode = #tpu.pipeline_mode<synchronous>, transform_indices = @transform_3, window_bounds = array<i64: 64, 128>}, {pipeline_mode = #tpu.pipeline_mode<synchronous>, transform_indices = @transform_4, window_bounds = array<i64: 1, 128>}, {pipeline_mode = #tpu.pipeline_mode<synchronous>, transform_indices = @transform_5, window_bounds = array<i64: 2, 128>}, {pipeline_mode = #tpu.pipeline_mode<synchronous>, transform_indices = @transform_6, window_bounds = array<i64: 1, 128>}, {pipeline_mode = #tpu.pipeline_mode<synchronous>, transform_indices = @transform_7, window_bounds = array<i64: 64, 128>}, {pipeline_mode = #tpu.pipeline_mode<synchronous>, transform_indices = @transform_8, window_bounds = array<i64: 1, 128>}, {pipeline_mode = #tpu.pipeline_mode<synchronous>, transform_indices = @transform_9, window_bounds = array<i64: 128, 256>}, {pipeline_mode = #tpu.pipeline_mode<synchronous>, transform_indices = @transform_10, window_bounds = array<i64: 1, 256>}, {pipeline_mode = #tpu.pipeline_mode<synchronous>, transform_indices = @transform_11, window_bounds = array<i64: 1, 256>}, {pipeline_mode = #tpu.pipeline_mode<synchronous>, transform_indices = @transform_12, window_bounds = array<i64: 1, 256>}, {pipeline_mode = #tpu.pipeline_mode<synchronous>, transform_indices = @transform_13, window_bounds = array<i64: 1, 256>}, {pipeline_mode = #tpu.pipeline_mode<synchronous>, transform_indices = @transform_14, window_bounds = array<i64: 1, 256>}, {pipeline_mode = #tpu.pipeline_mode<synchronous>, transform_indices = @transform_15, window_bounds = array<i64: 256, 128>}, {pipeline_mode = #tpu.pipeline_mode<synchronous>, transform_indices = @transform_16, window_bounds = array<i64: 1, 128>}, {pipeline_mode = #tpu.pipeline_mode<synchronous>, transform_indices = @transform_17, window_bounds = array<i64: 1, 128>}, {pipeline_mode = #tpu.pipeline_mode<synchronous>, transform_indices = @transform_18, window_bounds = array<i64: 1, 128>}, {pipeline_mode = #tpu.pipeline_mode<synchronous>, transform_indices = @transform_19, window_bounds = array<i64: 128, 128>}, {pipeline_mode = #tpu.pipeline_mode<synchronous>, transform_indices = @transform_20, window_bounds = array<i64: 128, 128>}, {pipeline_mode = #tpu.pipeline_mode<synchronous>, transform_indices = @transform_21, window_bounds = array<i64: 1, 128>}, {pipeline_mode = #tpu.pipeline_mode<synchronous>, transform_indices = @transform_22, window_bounds = array<i64: 64, 128>}, {pipeline_mode = #tpu.pipeline_mode<synchronous>, transform_indices = @transform_23, window_bounds = array<i64: 64, 128>}, {pipeline_mode = #tpu.pipeline_mode<synchronous>, transform_indices = @transform_24, window_bounds = array<i64: 64, 128>}]} {
    %c0_i32 = arith.constant 0 : i32
    %0 = arith.cmpi eq, %arg0, %c0_i32 : i32
    %1 = arith.extui %0 : i1 to i32
    %c0_i32_0 = arith.constant 0 : i32
    %2 = arith.cmpi ne, %1, %c0_i32_0 : i32
    scf.if %2 {
      %c0_16 = arith.constant 0 : index
      %c0_17 = arith.constant 0 : index
      %27 = vector.load %arg3[%c0_16, %c0_17] : memref<64x64xf32, #tpu.memory_space<vmem>>, vector<64x64xf32>
      %c0_18 = arith.constant 0 : index
      %c0_19 = arith.constant 0 : index
      %28 = vector.load %arg6[%c0_18, %c0_19] : memref<64x128xf32, #tpu.memory_space<vmem>>, vector<64x128xf32>
      %cst_20 = arith.constant dense<0.000000e+00> : vector<64x128xf32>
      %29 = tpu.matmul %27, %28, %cst_20 {dimension_numbers = #tpu.dot_dimension_numbers<[1], [0], [0], [1], [0, 0, 1, 1], [], []>} : vector<64x64xf32>, vector<64x128xf32>, vector<64x128xf32> -> vector<64x128xf32>
      %c0_21 = arith.constant 0 : index
      %c0_22 = arith.constant 0 : index
      %30 = vector.load %arg7[%c0_21, %c0_22] : memref<1x128xf32, #tpu.memory_space<vmem>>, vector<1x128xf32>
      %31 = vector.broadcast %30 : vector<1x128xf32> to vector<64x128xf32>
      %32 = arith.addf %29, %31 : vector<64x128xf32>
      %c0_23 = arith.constant 0 : index
      %c0_24 = arith.constant 0 : index
      %33 = vector.load %arg28[%c0_23, %c0_24] : memref<64x128xf32, #tpu.memory_space<vmem>>, vector<64x128xf32>
      tpu.vector_store %arg28[%c0_23, %c0_24], %32 {strides = array<i32>} : memref<64x128xf32, #tpu.memory_space<vmem>>, vector<64x128xf32>,
      %cst_25 = arith.constant -1.000000e+30 : f32
      %34 = vector.broadcast %cst_25 : f32 to vector<64x128xf32>
      %c0_26 = arith.constant 0 : index
      %c0_27 = arith.constant 0 : index
      %35 = vector.load %arg30[%c0_26, %c0_27] : memref<64x128xf32, #tpu.memory_space<vmem>>, vector<64x128xf32>
      tpu.vector_store %arg30[%c0_26, %c0_27], %34 {strides = array<i32>} : memref<64x128xf32, #tpu.memory_space<vmem>>, vector<64x128xf32>,
      %cst_28 = arith.constant 0.000000e+00 : f32
      %36 = vector.broadcast %cst_28 : f32 to vector<64x128xf32>
      %c0_29 = arith.constant 0 : index
      %c0_30 = arith.constant 0 : index
      %37 = vector.load %arg31[%c0_29, %c0_30] : memref<64x128xf32, #tpu.memory_space<vmem>>, vector<64x128xf32>
      tpu.vector_store %arg31[%c0_29, %c0_30], %36 {strides = array<i32>} : memref<64x128xf32, #tpu.memory_space<vmem>>, vector<64x128xf32>,
      %cst_31 = arith.constant 0.000000e+00 : f32
      %38 = vector.broadcast %cst_31 : f32 to vector<64x128xf32>
      %c0_32 = arith.constant 0 : index
      %c0_33 = arith.constant 0 : index
      %39 = vector.load %arg32[%c0_32, %c0_33] : memref<64x128xf32, #tpu.memory_space<vmem>>, vector<64x128xf32>
      tpu.vector_store %arg32[%c0_32, %c0_33], %38 {strides = array<i32>} : memref<64x128xf32, #tpu.memory_space<vmem>>, vector<64x128xf32>,
    } else {
    }
    %c0 = arith.constant 0 : index
    %c0_1 = arith.constant 0 : index
    %3 = vector.load %arg4[%c0, %c0_1] : memref<128x2xf32, #tpu.memory_space<vmem>>, vector<128x2xf32>
    %cst = arith.constant 0.000000e+00 : f32
    %4 = vector.broadcast %cst : f32 to vector<128x128xf32>
    %c0_2 = arith.constant 0 : index
    %c0_3 = arith.constant 0 : index
    %5 = vector.load %arg9[%c0_2, %c0_3] : memref<1x128xf32, #tpu.memory_space<vmem>>, vector<1x128xf32>
    %6 = vector.broadcast %5 : vector<1x128xf32> to vector<128x128xf32>
    %7 = arith.addf %4, %6 : vector<128x128xf32>
    %8 = vector.extract_strided_slice %3 {offsets = [0, 0], sizes = [128, 1], strides = [1, 1]} : vector<128x2xf32> to vector<128x1xf32>
    %c0_4 = arith.constant 0 : index
    %c0_5 = arith.constant 0 : index
    %9 = vector.load %arg8[%c0_4, %c0_5] : memref<2x128xf32, #tpu.memory_space<vmem>>, vector<1x128xf32>
    %10 = vector.broadcast %8 : vector<128x1xf32> to vector<128x128xf32>
    %11 = vector.broadcast %9 : vector<1x128xf32> to vector<128x128xf32>
    %12 = arith.mulf %10, %11 : vector<128x128xf32>
    %13 = arith.addf %7, %12 : vector<128x128xf32>
    %14 = vector.extract_strided_slice %3 {offsets = [0, 1], sizes = [128, 1], strides = [1, 1]} : vector<128x2xf32> to vector<128x1xf32>
    %c1 = arith.constant 1 : index
    %c0_6 = arith.constant 0 : index
    %15 = vector.load %arg8[%c1, %c0_6] : memref<2x128xf32, #tpu.memory_space<vmem>>, vector<1x128xf32>
    %16 = vector.broadcast %14 : vector<128x1xf32> to vector<128x128xf32>
    %17 = vector.broadcast %15 : vector<1x128xf32> to vector<128x128xf32>
    %18 = arith.mulf %16, %17 : vector<128x128xf32>
    %19 = arith.addf %13, %18 : vector<128x128xf32>
    %c0_7 = arith.constant 0 : index
    %c0_8 = arith.constant 0 : index
    %20 = vector.load %arg29[%c0_7, %c0_8] : memref<128x128xf32, #tpu.memory_space<vmem>>, vector<128x128xf32>
    tpu.vector_store %arg29[%c0_7, %c0_8], %19 {strides = array<i32>} : memref<128x128xf32, #tpu.memory_space<vmem>>, vector<128x128xf32>,
    %c0_9 = arith.constant 0 : index
    %c0_10 = arith.constant 0 : index
    %21 = memref.load %arg5[%c0_9, %c0_10] : memref<1x1xf32, #tpu.memory_space<smem>>
    %c128_i32 = arith.constant 128 : i32
    %22 = arith.muli %arg0, %c128_i32 : i32
    %c0_i32_11 = arith.constant 0 : i32
    %c128_i32_12 = arith.constant 128 : i32
    %23 = arith.addi %c0_i32_11, %c128_i32_12 : i32
    %c1_i32 = arith.constant 1 : i32
    scf.for %arg33 = %c0_i32_11 to %23 step %c1_i32  : i32 {
      %27 = arith.addi %22, %arg33 : i32
      %c200_i32 = arith.constant 200 : i32
      %28 = arith.cmpi slt, %27, %c200_i32 : i32
      %29 = arith.extui %28 : i1 to i32
      %c0_i32_16 = arith.constant 0 : i32
      %30 = arith.cmpi ne, %29, %c0_i32_16 : i32
      scf.if %30 {
        %31 = arith.addi %22, %arg33 : i32
        %32 = arith.index_cast %31 : i32 to index
        %33 = memref.load %arg1[%32] : memref<256xi32, #tpu.memory_space<smem>>
        %34 = arith.addi %22, %arg33 : i32
        %35 = arith.index_cast %34 : i32 to index
        %36 = memref.load %arg2[%35] : memref<256xi32, #tpu.memory_space<smem>>
        %37 = arith.index_cast %33 : i32 to index
        %c0_17 = arith.constant 0 : index
        %38 = vector.load %arg28[%37, %c0_17] : memref<64x128xf32, #tpu.memory_space<vmem>>, vector<1x128xf32>
        %39 = arith.index_cast %arg33 : i32 to index
        %c0_18 = arith.constant 0 : index
        %40 = vector.load %arg29[%39, %c0_18] : memref<128x128xf32, #tpu.memory_space<vmem>>, vector<1x128xf32>
        %41 = arith.addf %38, %40 : vector<1x128xf32>
        %cst_19 = arith.constant 0.000000e+00 : f32
        %42 = vector.broadcast %cst_19 : f32 to vector<1x128xf32>
        %43 = arith.maximumf %41, %42 : vector<1x128xf32>
        %cst_20 = arith.constant 1.000000e-07 : f32
        %44 = vector.broadcast %cst_20 : f32 to vector<1x128xf32>
        %45 = arith.addf %43, %44 : vector<1x128xf32>
        %46 = vector.broadcast %21 : f32 to vector<1x128xf32>
        %47 = arith.mulf %45, %46 : vector<1x128xf32>
        %48 = arith.index_cast %36 : i32 to index
        %c0_21 = arith.constant 0 : index
        %49 = vector.load %arg30[%48, %c0_21] : memref<64x128xf32, #tpu.memory_space<vmem>>, vector<1x128xf32>
        %50 = arith.maximumf %49, %47 : vector<1x128xf32>
        %51 = arith.subf %49, %50 : vector<1x128xf32>
        %52 = math.exp %51 : vector<1x128xf32>
        %53 = arith.subf %47, %50 : vector<1x128xf32>
        %54 = math.exp %53 : vector<1x128xf32>
        %55 = arith.index_cast %36 : i32 to index
        %c0_22 = arith.constant 0 : index
        %56 = vector.load %arg31[%55, %c0_22] : memref<64x128xf32, #tpu.memory_space<vmem>>, vector<1x128xf32>
        %57 = arith.mulf %56, %52 : vector<1x128xf32>
        %58 = arith.addf %57, %54 : vector<1x128xf32>
        %59 = arith.index_cast %36 : i32 to index
        %c0_23 = arith.constant 0 : index
        %60 = vector.load %arg31[%59, %c0_23] : memref<64x128xf32, #tpu.memory_space<vmem>>, vector<1x128xf32>
        tpu.vector_store %arg31[%59, %c0_23], %58 {strides = array<i32>} : memref<64x128xf32, #tpu.memory_space<vmem>>, vector<1x128xf32>,
        %61 = arith.index_cast %36 : i32 to index
        %c0_24 = arith.constant 0 : index
        %62 = vector.load %arg32[%61, %c0_24] : memref<64x128xf32, #tpu.memory_space<vmem>>, vector<1x128xf32>
        %63 = arith.mulf %62, %52 : vector<1x128xf32>
        %64 = arith.mulf %54, %45 : vector<1x128xf32>
        %65 = arith.addf %63, %64 : vector<1x128xf32>
        %66 = arith.index_cast %36 : i32 to index
        %c0_25 = arith.constant 0 : index
        %67 = vector.load %arg32[%66, %c0_25] : memref<64x128xf32, #tpu.memory_space<vmem>>, vector<1x128xf32>
        tpu.vector_store %arg32[%66, %c0_25], %65 {strides = array<i32>} : memref<64x128xf32, #tpu.memory_space<vmem>>, vector<1x128xf32>,
        %68 = arith.index_cast %36 : i32 to index
        %c0_26 = arith.constant 0 : index
        %69 = vector.load %arg30[%68, %c0_26] : memref<64x128xf32, #tpu.memory_space<vmem>>, vector<1x128xf32>
        tpu.vector_store %arg30[%68, %c0_26], %50 {strides = array<i32>} : memref<64x128xf32, #tpu.memory_space<vmem>>, vector<1x128xf32>,
      } else {
      }
    }
    %c128_i32_13 = arith.constant 128 : i32
    %c1_i32_14 = arith.constant 1 : i32
    %24 = arith.cmpi eq, %arg0, %c1_i32_14 : i32
    %25 = arith.extui %24 : i1 to i32
    %c0_i32_15 = arith.constant 0 : i32
    %26 = arith.cmpi ne, %25, %c0_i32_15 : i32
    scf.if %26 {
      %c0_16 = arith.constant 0 : index
      %c0_17 = arith.constant 0 : index
      %27 = vector.load %arg31[%c0_16, %c0_17] : memref<64x128xf32, #tpu.memory_space<vmem>>, vector<64x128xf32>
      %cst_18 = arith.constant 0.000000e+00 : f32
      %28 = vector.broadcast %cst_18 : f32 to vector<64x128xf32>
      %29 = arith.cmpf ogt, %27, %28 : vector<64x128xf32>
      %c0_19 = arith.constant 0 : index
      %c0_20 = arith.constant 0 : index
      %30 = vector.load %arg32[%c0_19, %c0_20] : memref<64x128xf32, #tpu.memory_space<vmem>>, vector<64x128xf32>
      %cst_21 = arith.constant 1.000000e-16 : f32
      %31 = vector.broadcast %cst_21 : f32 to vector<64x128xf32>
      %32 = arith.maximumf %27, %31 : vector<64x128xf32>
      %33 = arith.divf %30, %32 : vector<64x128xf32>
      %cst_22 = arith.constant 0.000000e+00 : f32
      %34 = vector.broadcast %cst_22 : f32 to vector<64x128xf32>
      %35 = arith.select %29, %33, %34 : vector<64x128xi1>, vector<64x128xf32>
      %c0_23 = arith.constant 0 : index
      %c0_24 = arith.constant 0 : index
      %36 = vector.load %arg3[%c0_23, %c0_24] : memref<64x64xf32, #tpu.memory_space<vmem>>, vector<64x64xf32>
      %c0_25 = arith.constant 0 : index
      %c0_26 = arith.constant 0 : index
      %37 = vector.load %arg10[%c0_25, %c0_26] : memref<64x128xf32, #tpu.memory_space<vmem>>, vector<64x128xf32>
      %cst_27 = arith.constant dense<0.000000e+00> : vector<64x128xf32>
      %38 = tpu.matmul %36, %37, %cst_27 {dimension_numbers = #tpu.dot_dimension_numbers<[1], [0], [0], [1], [0, 0, 1, 1], [], []>} : vector<64x64xf32>, vector<64x128xf32>, vector<64x128xf32> -> vector<64x128xf32>
      %39 = arith.addf %35, %38 : vector<64x128xf32>
      %c0_28 = arith.constant 0 : index
      %c0_29 = arith.constant 0 : index
      %40 = vector.load %arg11[%c0_28, %c0_29] : memref<1x128xf32, #tpu.memory_space<vmem>>, vector<1x128xf32>
      %41 = vector.broadcast %40 : vector<1x128xf32> to vector<64x128xf32>
      %42 = arith.addf %39, %41 : vector<64x128xf32>
      %c0_30 = arith.constant 0 : index
      %c0_31 = arith.constant 0 : index
      %43 = vector.load %arg12[%c0_30, %c0_31] : memref<128x256xf32, #tpu.memory_space<vmem>>, vector<128x256xf32>
      %cst_32 = arith.constant dense<0.000000e+00> : vector<64x256xf32>
      %44 = tpu.matmul %42, %43, %cst_32 {dimension_numbers = #tpu.dot_dimension_numbers<[1], [0], [0], [1], [0, 0, 1, 1], [], []>} : vector<64x128xf32>, vector<128x256xf32>, vector<64x256xf32> -> vector<64x256xf32>
      %c0_33 = arith.constant 0 : index
      %c0_34 = arith.constant 0 : index
      %45 = vector.load %arg13[%c0_33, %c0_34] : memref<1x256xf32, #tpu.memory_space<vmem>>, vector<1x256xf32>
      %46 = vector.broadcast %45 : vector<1x256xf32> to vector<64x256xf32>
      %47 = arith.addf %44, %46 : vector<64x256xf32>
      %c0_35 = arith.constant 0 : index
      %c0_36 = arith.constant 0 : index
      %48 = vector.load %arg16[%c0_35, %c0_36] : memref<1x256xf32, #tpu.memory_space<vmem>>, vector<1x256xf32>
      %49 = vector.broadcast %48 : vector<1x256xf32> to vector<64x256xf32>
      %50 = arith.subf %47, %49 : vector<64x256xf32>
      %c0_37 = arith.constant 0 : index
      %c0_38 = arith.constant 0 : index
      %51 = vector.load %arg17[%c0_37, %c0_38] : memref<1x256xf32, #tpu.memory_space<vmem>>, vector<1x256xf32>
      %cst_39 = arith.constant 9.99999974E-6 : f32
      %52 = vector.broadcast %cst_39 : f32 to vector<1x256xf32>
      %53 = arith.addf %51, %52 : vector<1x256xf32>
      %54 = math.rsqrt %53 : vector<1x256xf32>
      %55 = vector.broadcast %54 : vector<1x256xf32> to vector<64x256xf32>
      %56 = arith.mulf %50, %55 : vector<64x256xf32>
      %c0_40 = arith.constant 0 : index
      %c0_41 = arith.constant 0 : index
      %57 = vector.load %arg14[%c0_40, %c0_41] : memref<1x256xf32, #tpu.memory_space<vmem>>, vector<1x256xf32>
      %58 = vector.broadcast %57 : vector<1x256xf32> to vector<64x256xf32>
      %59 = arith.mulf %56, %58 : vector<64x256xf32>
      %c0_42 = arith.constant 0 : index
      %c0_43 = arith.constant 0 : index
      %60 = vector.load %arg15[%c0_42, %c0_43] : memref<1x256xf32, #tpu.memory_space<vmem>>, vector<1x256xf32>
      %61 = vector.broadcast %60 : vector<1x256xf32> to vector<64x256xf32>
      %62 = arith.addf %59, %61 : vector<64x256xf32>
      %cst_44 = arith.constant 0.000000e+00 : f32
      %63 = vector.broadcast %cst_44 : f32 to vector<64x256xf32>
      %64 = arith.maximumf %62, %63 : vector<64x256xf32>
      %c0_45 = arith.constant 0 : index
      %c0_46 = arith.constant 0 : index
      %65 = vector.load %arg18[%c0_45, %c0_46] : memref<256x128xf32, #tpu.memory_space<vmem>>, vector<256x128xf32>
      %cst_47 = arith.constant dense<0.000000e+00> : vector<64x128xf32>
      %66 = tpu.matmul %64, %65, %cst_47 {dimension_numbers = #tpu.dot_dimension_numbers<[1], [0], [0], [1], [0, 0, 1, 1], [], []>} : vector<64x256xf32>, vector<256x128xf32>, vector<64x128xf32> -> vector<64x128xf32>
      %c0_48 = arith.constant 0 : index
      %c0_49 = arith.constant 0 : index
      %67 = vector.load %arg19[%c0_48, %c0_49] : memref<1x128xf32, #tpu.memory_space<vmem>>, vector<1x128xf32>
      %68 = vector.broadcast %67 : vector<1x128xf32> to vector<64x128xf32>
      %69 = arith.addf %66, %68 : vector<64x128xf32>
      %cst_50 = arith.constant dense<0.000000e+00> : vector<64xf32>
      %70 = vector.multi_reduction <add>, %69, %cst_50 [1] : vector<64x128xf32> to vector<64xf32>
      %71 = vector.shape_cast %70 : vector<64xf32> to vector<64x1xf32>
      %cst_51 = arith.constant 1.280000e+02 : f32
      %72 = vector.broadcast %cst_51 : f32 to vector<64x1xf32>
      %73 = arith.divf %71, %72 : vector<64x1xf32>
      %74 = vector.broadcast %73 : vector<64x1xf32> to vector<64x128xf32>
      %75 = arith.subf %69, %74 : vector<64x128xf32>
      %76 = arith.mulf %75, %75 : vector<64x128xf32>
      %cst_52 = arith.constant dense<0.000000e+00> : vector<64xf32>
      %77 = vector.multi_reduction <add>, %76, %cst_52 [1] : vector<64x128xf32> to vector<64xf32>
      %78 = vector.shape_cast %77 : vector<64xf32> to vector<64x1xf32>
      %cst_53 = arith.constant 1.280000e+02 : f32
      %79 = vector.broadcast %cst_53 : f32 to vector<64x1xf32>
      %80 = arith.divf %78, %79 : vector<64x1xf32>
      %81 = vector.broadcast %73 : vector<64x1xf32> to vector<64x128xf32>
      %82 = arith.subf %69, %81 : vector<64x128xf32>
      %cst_54 = arith.constant 9.99999974E-6 : f32
      %83 = vector.broadcast %cst_54 : f32 to vector<64x1xf32>
      %84 = arith.addf %80, %83 : vector<64x1xf32>
      %85 = math.rsqrt %84 : vector<64x1xf32>
      %86 = vector.broadcast %85 : vector<64x1xf32> to vector<64x128xf32>
      %87 = arith.mulf %82, %86 : vector<64x128xf32>
      %c0_55 = arith.constant 0 : index
      %c0_56 = arith.constant 0 : index
      %88 = vector.load %arg20[%c0_55, %c0_56] : memref<1x128xf32, #tpu.memory_space<vmem>>, vector<1x128xf32>
      %89 = vector.broadcast %88 : vector<1x128xf32> to vector<64x128xf32>
      %90 = arith.mulf %87, %89 : vector<64x128xf32>
      %c0_57 = arith.constant 0 : index
      %c0_58 = arith.constant 0 : index
      %91 = vector.load %arg21[%c0_57, %c0_58] : memref<1x128xf32, #tpu.memory_space<vmem>>, vector<1x128xf32>
      %92 = vector.broadcast %91 : vector<1x128xf32> to vector<64x128xf32>
      %93 = arith.addf %90, %92 : vector<64x128xf32>
      %cst_59 = arith.constant 0.000000e+00 : f32
      %94 = vector.broadcast %cst_59 : f32 to vector<64x128xf32>
      %95 = arith.cmpf ogt, %93, %94 : vector<64x128xf32>
      %cst_60 = arith.constant 0.000000e+00 : f32
      %96 = vector.broadcast %cst_60 : f32 to vector<64x128xf32>
      %97 = arith.minimumf %93, %96 : vector<64x128xf32>
      %98 = math.exp %97 : vector<64x128xf32>
      %cst_61 = arith.constant 1.000000e+00 : f32
      %99 = vector.broadcast %cst_61 : f32 to vector<64x128xf32>
      %100 = arith.subf %98, %99 : vector<64x128xf32>
      %101 = arith.select %95, %93, %100 : vector<64x128xi1>, vector<64x128xf32>
      %c0_62 = arith.constant 0 : index
      %c0_63 = arith.constant 0 : index
      %102 = vector.load %arg25[%c0_62, %c0_63] : memref<64x128xf32, #tpu.memory_space<vmem>>, vector<64x128xf32>
      tpu.vector_store %arg25[%c0_62, %c0_63], %101 {strides = array<i32>} : memref<64x128xf32, #tpu.memory_space<vmem>>, vector<64x128xf32>,
      %c0_64 = arith.constant 0 : index
      %c0_65 = arith.constant 0 : index
      %103 = vector.load %arg22[%c0_64, %c0_65] : memref<128x128xf32, #tpu.memory_space<vmem>>, vector<128x128xf32>
      %cst_66 = arith.constant dense<0.000000e+00> : vector<64x128xf32>
      %104 = tpu.matmul %101, %103, %cst_66 {dimension_numbers = #tpu.dot_dimension_numbers<[1], [0], [0], [1], [0, 0, 1, 1], [], []>} : vector<64x128xf32>, vector<128x128xf32>, vector<64x128xf32> -> vector<64x128xf32>
      %c0_67 = arith.constant 0 : index
      %c0_68 = arith.constant 0 : index
      %105 = vector.load %arg24[%c0_67, %c0_68] : memref<1x128xf32, #tpu.memory_space<vmem>>, vector<1x128xf32>
      %106 = vector.broadcast %105 : vector<1x128xf32> to vector<64x128xf32>
      %107 = arith.addf %104, %106 : vector<64x128xf32>
      %c0_69 = arith.constant 0 : index
      %c0_70 = arith.constant 0 : index
      %108 = vector.load %arg26[%c0_69, %c0_70] : memref<64x128xf32, #tpu.memory_space<vmem>>, vector<64x128xf32>
      tpu.vector_store %arg26[%c0_69, %c0_70], %107 {strides = array<i32>} : memref<64x128xf32, #tpu.memory_space<vmem>>, vector<64x128xf32>,
      %c0_71 = arith.constant 0 : index
      %c0_72 = arith.constant 0 : index
      %109 = vector.load %arg23[%c0_71, %c0_72] : memref<128x128xf32, #tpu.memory_space<vmem>>, vector<128x128xf32>
      %cst_73 = arith.constant dense<0.000000e+00> : vector<64x128xf32>
      %110 = tpu.matmul %101, %109, %cst_73 {dimension_numbers = #tpu.dot_dimension_numbers<[1], [0], [0], [1], [0, 0, 1, 1], [], []>} : vector<64x128xf32>, vector<128x128xf32>, vector<64x128xf32> -> vector<64x128xf32>
      %c0_74 = arith.constant 0 : index
      %c0_75 = arith.constant 0 : index
      %111 = vector.load %arg27[%c0_74, %c0_75] : memref<64x128xf32, #tpu.memory_space<vmem>>, vector<64x128xf32>
      tpu.vector_store %arg27[%c0_74, %c0_75], %110 {strides = array<i32>} : memref<64x128xf32, #tpu.memory_space<vmem>>, vector<64x128xf32>,
    } else {
    }
    return
  }
  func.func @transform_0(%arg0: i32, %arg1: memref<256xi32, #tpu.memory_space<smem>>, %arg2: memref<256xi32, #tpu.memory_space<smem>>) -> (i32, i32) {
    %c0_i32 = arith.constant 0 : i32
    %c0_i32_0 = arith.constant 0 : i32
    %c0_i32_1 = arith.constant 0 : i32
    return %c0_i32, %c0_i32_0 : i32, i32
  }
  func.func @transform_1(%arg0: i32, %arg1: memref<256xi32, #tpu.memory_space<smem>>, %arg2: memref<256xi32, #tpu.memory_space<smem>>) -> (i32, i32) {
    %c0_i32 = arith.constant 0 : i32
    %c0_i32_0 = arith.constant 0 : i32
    return %arg0, %c0_i32 : i32, i32
  }
  func.func @transform_2(%arg0: i32, %arg1: memref<256xi32, #tpu.memory_space<smem>>, %arg2: memref<256xi32, #tpu.memory_space<smem>>) -> (i32, i32) {
    %c0_i32 = arith.constant 0 : i32
    %c0_i32_0 = arith.constant 0 : i32
    %c0_i32_1 = arith.constant 0 : i32
    return %c0_i32, %c0_i32_0 : i32, i32
  }
  func.func @transform_3(%arg0: i32, %arg1: memref<256xi32, #tpu.memory_space<smem>>, %arg2: memref<256xi32, #tpu.memory_space<smem>>) -> (i32, i32) {
    %c0_i32 = arith.constant 0 : i32
    %c0_i32_0 = arith.constant 0 : i32
    %c0_i32_1 = arith.constant 0 : i32
    return %c0_i32, %c0_i32_0 : i32, i32
  }
  func.func @transform_4(%arg0: i32, %arg1: memref<256xi32, #tpu.memory_space<smem>>, %arg2: memref<256xi32, #tpu.memory_space<smem>>) -> (i32, i32) {
    %c0_i32 = arith.constant 0 : i32
    %c0_i32_0 = arith.constant 0 : i32
    %c0_i32_1 = arith.constant 0 : i32
    return %c0_i32, %c0_i32_0 : i32, i32
  }
  func.func @transform_5(%arg0: i32, %arg1: memref<256xi32, #tpu.memory_space<smem>>, %arg2: memref<256xi32, #tpu.memory_space<smem>>) -> (i32, i32) {
    %c0_i32 = arith.constant 0 : i32
    %c0_i32_0 = arith.constant 0 : i32
    %c0_i32_1 = arith.constant 0 : i32
    return %c0_i32, %c0_i32_0 : i32, i32
  }
  func.func @transform_6(%arg0: i32, %arg1: memref<256xi32, #tpu.memory_space<smem>>, %arg2: memref<256xi32, #tpu.memory_space<smem>>) -> (i32, i32) {
    %c0_i32 = arith.constant 0 : i32
    %c0_i32_0 = arith.constant 0 : i32
    %c0_i32_1 = arith.constant 0 : i32
    return %c0_i32, %c0_i32_0 : i32, i32
  }
  func.func @transform_7(%arg0: i32, %arg1: memref<256xi32, #tpu.memory_space<smem>>, %arg2: memref<256xi32, #tpu.memory_space<smem>>) -> (i32, i32) {
    %c0_i32 = arith.constant 0 : i32
    %c0_i32_0 = arith.constant 0 : i32
    %c0_i32_1 = arith.constant 0 : i32
    return %c0_i32, %c0_i32_0 : i32, i32
  }
  func.func @transform_8(%arg0: i32, %arg1: memref<256xi32, #tpu.memory_space<smem>>, %arg2: memref<256xi32, #tpu.memory_space<smem>>) -> (i32, i32) {
    %c0_i32 = arith.constant 0 : i32
    %c0_i32_0 = arith.constant 0 : i32
    %c0_i32_1 = arith.constant 0 : i32
    return %c0_i32, %c0_i32_0 : i32, i32
  }
  func.func @transform_9(%arg0: i32, %arg1: memref<256xi32, #tpu.memory_space<smem>>, %arg2: memref<256xi32, #tpu.memory_space<smem>>) -> (i32, i32) {
    %c0_i32 = arith.constant 0 : i32
    %c0_i32_0 = arith.constant 0 : i32
    %c0_i32_1 = arith.constant 0 : i32
    return %c0_i32, %c0_i32_0 : i32, i32
  }
  func.func @transform_10(%arg0: i32, %arg1: memref<256xi32, #tpu.memory_space<smem>>, %arg2: memref<256xi32, #tpu.memory_space<smem>>) -> (i32, i32) {
    %c0_i32 = arith.constant 0 : i32
    %c0_i32_0 = arith.constant 0 : i32
    %c0_i32_1 = arith.constant 0 : i32
    return %c0_i32, %c0_i32_0 : i32, i32
  }
  func.func @transform_11(%arg0: i32, %arg1: memref<256xi32, #tpu.memory_space<smem>>, %arg2: memref<256xi32, #tpu.memory_space<smem>>) -> (i32, i32) {
    %c0_i32 = arith.constant 0 : i32
    %c0_i32_0 = arith.constant 0 : i32
    %c0_i32_1 = arith.constant 0 : i32
    return %c0_i32, %c0_i32_0 : i32, i32
  }
  func.func @transform_12(%arg0: i32, %arg1: memref<256xi32, #tpu.memory_space<smem>>, %arg2: memref<256xi32, #tpu.memory_space<smem>>) -> (i32, i32) {
    %c0_i32 = arith.constant 0 : i32
    %c0_i32_0 = arith.constant 0 : i32
    %c0_i32_1 = arith.constant 0 : i32
    return %c0_i32, %c0_i32_0 : i32, i32
  }
  func.func @transform_13(%arg0: i32, %arg1: memref<256xi32, #tpu.memory_space<smem>>, %arg2: memref<256xi32, #tpu.memory_space<smem>>) -> (i32, i32) {
    %c0_i32 = arith.constant 0 : i32
    %c0_i32_0 = arith.constant 0 : i32
    %c0_i32_1 = arith.constant 0 : i32
    return %c0_i32, %c0_i32_0 : i32, i32
  }
  func.func @transform_14(%arg0: i32, %arg1: memref<256xi32, #tpu.memory_space<smem>>, %arg2: memref<256xi32, #tpu.memory_space<smem>>) -> (i32, i32) {
    %c0_i32 = arith.constant 0 : i32
    %c0_i32_0 = arith.constant 0 : i32
    %c0_i32_1 = arith.constant 0 : i32
    return %c0_i32, %c0_i32_0 : i32, i32
  }
  func.func @transform_15(%arg0: i32, %arg1: memref<256xi32, #tpu.memory_space<smem>>, %arg2: memref<256xi32, #tpu.memory_space<smem>>) -> (i32, i32) {
    %c0_i32 = arith.constant 0 : i32
    %c0_i32_0 = arith.constant 0 : i32
    %c0_i32_1 = arith.constant 0 : i32
    return %c0_i32, %c0_i32_0 : i32, i32
  }
  func.func @transform_16(%arg0: i32, %arg1: memref<256xi32, #tpu.memory_space<smem>>, %arg2: memref<256xi32, #tpu.memory_space<smem>>) -> (i32, i32) {
    %c0_i32 = arith.constant 0 : i32
    %c0_i32_0 = arith.constant 0 : i32
    %c0_i32_1 = arith.constant 0 : i32
    return %c0_i32, %c0_i32_0 : i32, i32
  }
  func.func @transform_17(%arg0: i32, %arg1: memref<256xi32, #tpu.memory_space<smem>>, %arg2: memref<256xi32, #tpu.memory_space<smem>>) -> (i32, i32) {
    %c0_i32 = arith.constant 0 : i32
    %c0_i32_0 = arith.constant 0 : i32
    %c0_i32_1 = arith.constant 0 : i32
    return %c0_i32, %c0_i32_0 : i32, i32
  }
  func.func @transform_18(%arg0: i32, %arg1: memref<256xi32, #tpu.memory_space<smem>>, %arg2: memref<256xi32, #tpu.memory_space<smem>>) -> (i32, i32) {
    %c0_i32 = arith.constant 0 : i32
    %c0_i32_0 = arith.constant 0 : i32
    %c0_i32_1 = arith.constant 0 : i32
    return %c0_i32, %c0_i32_0 : i32, i32
  }
  func.func @transform_19(%arg0: i32, %arg1: memref<256xi32, #tpu.memory_space<smem>>, %arg2: memref<256xi32, #tpu.memory_space<smem>>) -> (i32, i32) {
    %c0_i32 = arith.constant 0 : i32
    %c0_i32_0 = arith.constant 0 : i32
    %c0_i32_1 = arith.constant 0 : i32
    return %c0_i32, %c0_i32_0 : i32, i32
  }
  func.func @transform_20(%arg0: i32, %arg1: memref<256xi32, #tpu.memory_space<smem>>, %arg2: memref<256xi32, #tpu.memory_space<smem>>) -> (i32, i32) {
    %c0_i32 = arith.constant 0 : i32
    %c0_i32_0 = arith.constant 0 : i32
    %c0_i32_1 = arith.constant 0 : i32
    return %c0_i32, %c0_i32_0 : i32, i32
  }
  func.func @transform_21(%arg0: i32, %arg1: memref<256xi32, #tpu.memory_space<smem>>, %arg2: memref<256xi32, #tpu.memory_space<smem>>) -> (i32, i32) {
    %c0_i32 = arith.constant 0 : i32
    %c0_i32_0 = arith.constant 0 : i32
    %c0_i32_1 = arith.constant 0 : i32
    return %c0_i32, %c0_i32_0 : i32, i32
  }
  func.func @transform_22(%arg0: i32, %arg1: memref<256xi32, #tpu.memory_space<smem>>, %arg2: memref<256xi32, #tpu.memory_space<smem>>) -> (i32, i32) {
    %c0_i32 = arith.constant 0 : i32
    %c0_i32_0 = arith.constant 0 : i32
    %c0_i32_1 = arith.constant 0 : i32
    return %c0_i32, %c0_i32_0 : i32, i32
  }
  func.func @transform_23(%arg0: i32, %arg1: memref<256xi32, #tpu.memory_space<smem>>, %arg2: memref<256xi32, #tpu.memory_space<smem>>) -> (i32, i32) {
    %c0_i32 = arith.constant 0 : i32
    %c0_i32_0 = arith.constant 0 : i32
    %c0_i32_1 = arith.constant 0 : i32
    return %c0_i32, %c0_i32_0 : i32, i32
  }
  func.func @transform_24(%arg0: i32, %arg1: memref<256xi32, #tpu.memory_space<smem>>, %arg2: memref<256xi32, #tpu.memory_space<smem>>) -> (i32, i32) {
    %c0_i32 = arith.constant 0 : i32
    %c0_i32_0 = arith.constant 0 : i32
    %c0_i32_1 = arith.constant 0 : i32
    return %c0_i32, %c0_i32_0 : i32, i32
  }
}

</mosaic_0001>

<bundles_post_ra>
// kernel: tpu_custom_call.1
= control target key start
LH: loop header
LB: loop body
LE: loop exit
PB: predicated region body
PF: predicated region fallthrough
CT: control target
= control target key end

     0   :  { %s4459_s0 = inlined_call_operand.vmem [shape: s32[256], index: 0, kind: input, shape index: {}]   ;;  %s4460_s2 = inlined_call_operand.hbm [shape: f32[64,64], index: 2, kind: input, shape index: {}]   ;;  %s4461_s3 = inlined_call_operand.vmem [shape: f32[256,2], index: 3, kind: input, shape index: {}]   ;;  %s4462_s5 = inlined_call_operand.hbm [shape: f32[64,128], index: 5, kind: input, shape index: {}]   ;;  %s4463_s6 = inlined_call_operand.vmem [shape: f32[1,128], index: 6, kind: input, shape index: {}]   ;;  %s4464_s7 = inlined_call_operand.vmem [shape: f32[2,128], index: 7, kind: input, shape index: {}]   ;;  %s4465_s8 = inlined_call_operand.vmem [shape: f32[1,128], index: 8, kind: input, shape index: {}]   ;;  %s4466_s9 = inlined_call_operand.hbm [shape: f32[64,128], index: 9, kind: input, shape index: {}]   ;;  %s4467_s10 = inlined_call_operand.vmem [shape: f32[1,128], index: 10, kind: input, shape index: {}]   ;;  %s4468_s11 = inlined_call_operand.vmem [shape: f32[128,256], index: 11, kind: input, shape index: {}]   ;;  %s4469_s12 = inlined_call_operand.vmem [shape: f32[1,256], index: 12, kind: input, shape index: {}]   ;;  %s4470_s13 = inlined_call_operand.vmem [shape: f32[1,256], index: 13, kind: input, shape index: {}]   ;;  %s4471_s14 = inlined_call_operand.vmem [shape: f32[1,256], index: 14, kind: input, shape index: {}]   ;;  %s4472_s15 = inlined_call_operand.vmem [shape: f32[1,256], index: 15, kind: input, shape index: {}]   ;;  %s4473_s16 = inlined_call_operand.vmem [shape: f32[1,256], index: 16, kind: input, shape index: {}]   ;;  %s4474_s17 = inlined_call_operand.hbm [shape: f32[256,128], index: 17, kind: input, shape index: {}]   ;;  %s4475_s18 = inlined_call_operand.vmem [shape: f32[1,128], index: 18, kind: input, shape index: {}]   ;;  %s4476_s19 = inlined_call_operand.vmem [shape: f32[1,128], index: 19, kind: input, shape index: {}]   ;;  %s4477_s20 = inlined_call_operand.vmem [shape: f32[1,128], index: 20, kind: input, shape index: {}]   ;;  %s4478_s21 = inlined_call_operand.hbm [shape: f32[128,128], index: 21, kind: input, shape index: {}]   ;;  %s4479_s22 = inlined_call_operand.hbm [shape: f32[128,128], index: 22, kind: input, shape index: {}]   ;;  %s4480_s23 = inlined_call_operand.vmem [shape: f32[1,128], index: 23, kind: input, shape index: {}]   ;;  %s4481_s24 = inlined_call_operand.hbm [shape: f32[64,128], index: 24, kind: output, shape index: {0}]   ;;  %s4482_s25 = inlined_call_operand.hbm [shape: f32[64,128], index: 25, kind: output, shape index: {1}]   ;;  %s4483_s26 = inlined_call_operand.hbm [shape: f32[64,128], index: 26, kind: output, shape index: {2}]   ;;  %s4484_s1 = inlined_call_operand.vmem [shape: s32[256], index: 1, kind: input, shape index: {}]   ;;  %s4485_s4 = inlined_call_operand.<no memory space> [shape: f32[1,1], index: 4, kind: input, shape index: {}]  }
   0x1   :  { %4498 = sst [smem:[#allocation34_spill]] %s4459_s0 }
   0x2   :  { %4499 = sst [smem:[#allocation35_spill]] %s4460_s2 }
   0x3   :  { %4500 = sst [smem:[#allocation36_spill]] %s4461_s3 }
   0x4   :  { %4501 = sst [smem:[#allocation37_spill]] %s4462_s5 }
   0x5   :  { %4502 = sst [smem:[#allocation38_spill]] %s4463_s6  ;;  %s36_s6 = sshll.u32 %s4484_s1, 4  ;;  %s37_s6 = int_to_ptr.vmem [resolvable:$true] %s36_s6 }
   0x6   :  { %4503 = sst [smem:[#allocation39_spill]] %s4464_s7 }
   0x7   :  { %4504 = sst [smem:[#allocation40_spill]] %s4465_s8 }
   0x8   :  { %4505 = sst [smem:[#allocation41_spill]] %s4466_s9  ;;  %s4512_s9 = sld [smem:[#allocation34_spill]] }
   0x9   :  { %4506 = sst [smem:[#allocation42_spill]] %s4467_s10 }
   0xa   :  { %4507 = sst [smem:[#allocation43_spill]] %s4468_s11 }
   0xb   :  { %4508 = sst [smem:[#allocation44_spill]] %s4469_s12 }
   0xc   :  { %4509 = sst [smem:[#allocation45_spill]] %s4477_s20 }
   0xd   :  { %4510 = sst [smem:[#allocation46_spill]] %s4481_s24 }
   0xe   :  { %4511 = sst [smem:[#allocation47_spill]] %s4483_s26  ;;  %s32_s20 = sshll.u32 %s4512_s9, 4  ;;  %s33_s20 = int_to_ptr.vmem [resolvable:$true] %s32_s20 }
   0xf   :  { %s3258_s29 = scalar_lea.vmem %s33_s20, 32  ;;  %p3263_p1 = scmp.lt.s32.totalorder %s33_s20, %s33_s20 }
  0x10   :  { %p3259_p0 = scmp.ne.s32.totalorder %s33_s20, %s3258_s29  ;;  %p3264_p2 = scmp.lt.s32.totalorder %s3258_s29, %s3258_s29 }
  0x12   :  { %p3265_p3 = por %p3264_p2, %p3263_p1 }
  0x14   :  { %p3266_p4 = pnand %p3265_p3, %p3259_p0 }
  0x16   :  { %3269 = shalt.err (!%p3266_p4)  }
  0x17   :  { %s3570_s0 = smov [#allocation8]   ;;  %s3270_s11 = scalar_lea.vmem %s37_s6, 32 }
  0x18   :  { %35 = dma.vmem_to_smem %s33_s20, 32, %s3570_s0, [#allocation7] }
  0x19   :  { %p3271_p5 = scmp.ne.s32.totalorder %s37_s6, %s3270_s11  ;;  %p3275_p6 = scmp.lt.s32.totalorder %s37_s6, %s37_s6 }
  0x1a   :  { %p3276_p7 = scmp.lt.s32.totalorder %s3270_s11, %s3270_s11 }
  0x1c   :  { %p3277_p8 = por %p3276_p7, %p3275_p6 }
  0x1e   :  { %p3278_p9 = pnand %p3277_p8, %p3271_p5 }
  0x20   :  { %3281 = shalt.err (!%p3278_p9)  }
  0x21   :  { %s3571_s30 = smov [#allocation9]   ;;  %40 = sst [smem:[#allocation10]] %s4485_s4 }
  0x22   :  { %39 = dma.vmem_to_smem %s37_s6, 32, %s3571_s30, [#allocation7] }
  0x23   :  { %3536 = dma.done.wait [#allocation7], 64 }
  0x24   :  { %3537 = vsyncadd [#allocation7], 4294967232 }
  0x25   :  { %42 = sfence }
  0x26   :  { %43 = vsyncpa [#allocation12], 0 }
  0x27   :  { %44 = vsyncpa [#allocation15], 0 }
  0x28   :  { %45 = vsyncpa [#allocation18], 0 }
  0x29   :  { %46 = vsyncpa [#allocation21], 0 }
  0x2a   :  { %47 = vsyncpa [#allocation13], 0 }
  0x2b   :  { %48 = vsyncpa [#allocation24], 0  ;;  %s3734_s20 = smov 0  }
  0x2c LB: > { %4513 = sst [smem:[#allocation33_spill]] %s3564_s20  ;;  %s3740_s4 = sadd.s32 4294967295, %s3564_s20   ;;  %s3564_s20 = sphi %s3734_s20, %s54_s20  }
  0x2d   : > { %p2581_p10 = scmp.ge.s32.totalorder %s3564_s20, 1  ;;  %p589_p11 = scmp.lt.s32.totalorder %s3564_s20, 3 }
  0x2e   : > { %p4494_p13 = scmp.eq.s32.totalorder %s3740_s4, 0  ;;  %s3572_s12 = smov [#allocation14]  }
  0x2f   : > { %p3746_p0 = pnand %p2581_p10, %p589_p11  ;;  %s617_s8 = sshll.u32 %s3572_s12, 4  ;;  %s3750_s8 = int_to_ptr.vmem [resolvable:$true] %s617_s8 }
  0x30   : > { %s3573_s2 = smov [#allocation17]   ;;  %s3574_s9 = smov [#allocation11]  }
  0x31   : > { %s4514_s7 = scalar_select %p3746_p0, 1, 0 }
  0x32   : > { %p3127_p1 = pneg %p3746_p0  ;;  %s673_s27 = sshll.u32 %s3573_s2, 4  ;;  %s3754_s27 = int_to_ptr.vmem [resolvable:$true] %s673_s27 }
  0x33   : > { %s601_s28 = sshll.u32 %s3574_s9, 4  ;;  %s3575_s10 = smov [#allocation16]   ;;  %s3762_s28 = int_to_ptr.vmem [resolvable:$true] %s601_s28 }
  0x34   : > { %p3758_p2 = pnand %p4494_p13, %p3127_p1  ;;  %s3764_s6 = sshll.u32 %s3575_s10, 4  ;;  %s640_s6 = int_to_ptr.vmem [resolvable:$true] %s3764_s6 }
  0x35   : > { %s4516_s11 = sld [smem:[#allocation37_spill]] }
  0x36   : > { %p3774_p4 = pneg %p3758_p2 }
  0x3b   : > { %s3282_s30 = scalar_lea.hbm %s4516_s11, 1024 }
  0x3c   : > { %p3283_p3 = scmp.ne.s32.totalorder %s4516_s11, %s3282_s30  ;;  %p3289_p7 = scmp.lt.u32.totalorder %s3282_s30, %s4516_s11 }
  0x3e   : > { %p3285_p5 = pnand %p3774_p4, %p3283_p3 }
  0x40   : > { %p3286_p6 = pneg %p3285_p5 }
  0x42   : > { %p3291_p8 = pnand %p3289_p7, %p3286_p6 }
  0x44   : > { %3294 = shalt.err (!%p3291_p8)
}
  0x45   : > { %s3295_s10 = scalar_lea.vmem %s3750_s8, 1024  ;;  %p3303_p1 = scmp.lt.s32.totalorder %s3750_s8, %s3750_s8 }
  0x46   : > { %p3296_p9 = scmp.ne.s32.totalorder %s3750_s8, %s3295_s10  ;;  %p3304_p12 = scmp.lt.s32.totalorder %s3295_s10, %s3295_s10 }
  0x48   : > { %p3298_p10 = pnand %p3296_p9, %p3774_p4  ;;  %p3305_p3 = por %p3304_p12, %p3303_p1 }
  0x4a   : > { %p3299_p11 = pneg %p3298_p10 }
  0x4c   : > { %p3306_p5 = pnand %p3305_p3, %p3299_p11 }
  0x4e   : > { %3309 = shalt.err (!%p3306_p5)
}
  0x4f   : > { %s3576_s29 = smov 128   ;;  %s3577_s0 = smov 8  }
  0x50   : > { %3133 = dma.hbm_to_vmem [thread:$0]  (!%p3758_p2), %s4516_s11, 1024, %s3750_s8, [#allocation15], %s3576_s29, %s3576_s29, %s3577_s0  }
  0x51   : > { %s3310_s9 = scalar_lea.hbm %s4474_s17, 4096 }
  0x52   : > { %p3311_p12 = scmp.ne.s32.totalorder %s4474_s17, %s3310_s9  ;;  %p3317_p8 = scmp.lt.u32.totalorder %s3310_s9, %s4474_s17 }
  0x54   : > { %p3313_p6 = pnand %p3311_p12, %p3774_p4 }
  0x56   : > { %p3314_p7 = pneg %p3313_p6 }
  0x58   : > { %p3319_p9 = pnand %p3317_p8, %p3314_p7 }
  0x5a   : > { %3322 = shalt.err (!%p3319_p9)
}
  0x5b   : > { %s3323_s8 = scalar_lea.vmem %s3754_s27, 4096  ;;  %p3331_p3 = scmp.lt.s32.totalorder %s3754_s27, %s3754_s27 }
  0x5c   : > { %p3324_p10 = scmp.ne.s32.totalorder %s3754_s27, %s3323_s8  ;;  %p3332_p5 = scmp.lt.s32.totalorder %s3323_s8, %s3323_s8 }
  0x5e   : > { %p3326_p11 = pnand %p3324_p10, %p3774_p4  ;;  %p3333_p12 = por %p3332_p5, %p3331_p3 }
  0x60   : > { %p3327_p1 = pneg %p3326_p11 }
  0x62   : > { %p3334_p6 = pnand %p3333_p12, %p3327_p1 }
  0x64   : > { %3337 = shalt.err (!%p3334_p6)
}
  0x65   : > { %3139 = dma.hbm_to_vmem [thread:$0]  (!%p3758_p2), %s4474_s17, 4096, %s3754_s27, [#allocation18], %s3576_s29, %s3576_s29, %s3577_s0  }
  0x66   : > { %s4518_s1 = sld [smem:[#allocation35_spill]] }
  0x6c   : > { %s3338_s3 = scalar_lea.hbm %s4518_s1, 1024 }
  0x6d   : > { %p3339_p7 = scmp.ne.s32.totalorder %s4518_s1, %s3338_s3  ;;  %p3345_p10 = scmp.lt.u32.totalorder %s3338_s3, %s4518_s1 }
  0x6f   : > { %p3341_p8 = pnand %p3339_p7, %p3774_p4 }
  0x71   : > { %p3342_p9 = pneg %p3341_p8 }
  0x73   : > { %p3347_p11 = pnand %p3345_p10, %p3342_p9 }
  0x75   : > { %3350 = shalt.err (!%p3347_p11)
}
  0x76   : > { %s3351_s27 = scalar_lea.vmem %s3762_s28, 1024  ;;  %p3359_p12 = scmp.lt.s32.totalorder %s3762_s28, %s3762_s28 }
  0x77   : > { %p3352_p1 = scmp.ne.s32.totalorder %s3762_s28, %s3351_s27  ;;  %p3360_p6 = scmp.lt.s32.totalorder %s3351_s27, %s3351_s27 }
  0x79   : > { %p3354_p3 = pnand %p3352_p1, %p3774_p4  ;;  %p3361_p7 = por %p3360_p6, %p3359_p12 }
  0x7b   : > { %p3355_p5 = pneg %p3354_p3 }
  0x7d   : > { %p3362_p8 = pnand %p3361_p7, %p3355_p5 }
  0x7f   : > { %3365 = shalt.err (!%p3362_p8)
}
  0x80   : > { %3130 = dma.hbm_to_vmem [thread:$0]  (!%p3758_p2), %s4518_s1, 1024, %s3762_s28, [#allocation12], %s3576_s29, %s3576_s29, %s3577_s0  }
  0x81   : > { %s4519_s3 = sld [smem:[#allocation41_spill]] }
  0x87   : > { %s3366_s2 = scalar_lea.hbm %s4519_s3, 1024 }
  0x88   : > { %p3367_p9 = scmp.ne.s32.totalorder %s4519_s3, %s3366_s2  ;;  %p3373_p1 = scmp.lt.u32.totalorder %s3366_s2, %s4519_s3 }
  0x8a   : > { %p3369_p10 = pnand %p3367_p9, %p3774_p4 }
  0x8c   : > { %p3370_p11 = pneg %p3369_p10 }
  0x8e   : > { %p3375_p3 = pnand %p3373_p1, %p3370_p11 }
  0x90   : > { %3378 = shalt.err (!%p3375_p3)
}
  0x91   : > { %s3379_s24 = scalar_lea.vmem %s640_s6, 1024  ;;  %p3387_p7 = scmp.lt.s32.totalorder %s640_s6, %s640_s6 }
  0x92   : > { %p3380_p5 = scmp.ne.s32.totalorder %s640_s6, %s3379_s24  ;;  %p3388_p8 = scmp.lt.s32.totalorder %s3379_s24, %s3379_s24 }
  0x94   : > { %p3382_p12 = pnand %p3380_p5, %p3774_p4  ;;  %p3389_p13 = por %p3388_p8, %p3387_p7 }
  0x96   : > { %p3383_p6 = pneg %p3382_p12 }
  0x98   : > { %p3390_p0 = pnand %p3389_p13, %p3383_p6 }
  0x9a   : > { %3393 = shalt.err (!%p3390_p0)
}
  0x9b   : > { %3136 = dma.hbm_to_vmem [thread:$0]  (!%p3758_p2), %s4519_s3, 1024, %s640_s6, [#allocation15], %s3576_s29, %s3576_s29, %s3577_s0  }
  0x9c   : > { %s3578_s20 = smov [#allocation19]   ;;  %s3579_s2 = smov [#allocation20]  }
  0x9d   : > { %s695_s30 = sshll.u32 %s3578_s20, 4  ;;  %s708_s9 = sshll.u32 %s3579_s2, 4  ;;  %s696_s30 = int_to_ptr.vmem [resolvable:$true] %s695_s30  ;;  %s709_s9 = int_to_ptr.vmem [resolvable:$true] %s708_s9 }
  0x9e   : > { %s3394_s27 = scalar_lea.hbm %s4478_s21, 2048 }
  0x9f   : > { %p3395_p13 = scmp.ne.s32.totalorder %s4478_s21, %s3394_s27  ;;  %p3401_p10 = scmp.lt.u32.totalorder %s3394_s27, %s4478_s21 }
  0xa1   : > { %p3397_p0 = pnand %p3395_p13, %p3774_p4 }
  0xa3   : > { %p3398_p9 = pneg %p3397_p0 }
  0xa5   : > { %p3403_p11 = pnand %p3401_p10, %p3398_p9 }
  0xa7   : > { %3406 = shalt.err (!%p3403_p11)
}
  0xa8   : > { %s3407_s6 = scalar_lea.vmem %s696_s30, 2048  ;;  %p3415_p12 = scmp.lt.s32.totalorder %s696_s30, %s696_s30 }
  0xa9   : > { %p3408_p1 = scmp.ne.s32.totalorder %s696_s30, %s3407_s6  ;;  %p3416_p6 = scmp.lt.s32.totalorder %s3407_s6, %s3407_s6 }
  0xab   : > { %p3410_p3 = pnand %p3408_p1, %p3774_p4  ;;  %p3417_p7 = por %p3416_p6, %p3415_p12 }
  0xad   : > { %p3411_p5 = pneg %p3410_p3 }
  0xaf   : > { %p3418_p8 = pnand %p3417_p7, %p3411_p5 }
  0xb1   : > { %3421 = shalt.err (!%p3418_p8)
}
  0xb2   : > { %3142 = dma.hbm_to_vmem [thread:$0]  (!%p3758_p2), %s4478_s21, 2048, %s696_s30, [#allocation18], %s3576_s29, %s3576_s29, %s3577_s0  }
  0xb3   : > { %s3422_s2 = scalar_lea.hbm %s4479_s22, 2048 }
  0xb4   : > { %p3423_p13 = scmp.ne.s32.totalorder %s4479_s22, %s3422_s2  ;;  %p3429_p10 = scmp.lt.u32.totalorder %s3422_s2, %s4479_s22 }
  0xb6   : > { %p3425_p0 = pnand %p3423_p13, %p3774_p4 }
  0xb8   : > { %p3426_p9 = pneg %p3425_p0 }
  0xba   : > { %p3431_p11 = pnand %p3429_p10, %p3426_p9 }
  0xbc   : > { %3434 = shalt.err (!%p3431_p11)
}
  0xbd   : > { %s3435_s28 = scalar_lea.vmem %s709_s9, 2048  ;;  %p3443_p12 = scmp.lt.s32.totalorder %s709_s9, %s709_s9 }
  0xbe   : > { %p3436_p1 = scmp.ne.s32.totalorder %s709_s9, %s3435_s28  ;;  %p3444_p6 = scmp.lt.s32.totalorder %s3435_s28, %s3435_s28 }
  0xc0   : > { %p3438_p3 = pnand %p3436_p1, %p3774_p4  ;;  %p3445_p7 = por %p3444_p6, %p3443_p12 }
  0xc2   : > { %p3439_p5 = pneg %p3438_p3 }
  0xc4   : > { %p3446_p8 = pnand %p3445_p7, %p3439_p5 }
  0xc6   : > { %3449 = shalt.err (!%p3446_p8)
}
  0xc7   : > { %3145 = dma.hbm_to_vmem [thread:$0]  (!%p3758_p2), %s4479_s22, 2048, %s709_s9, [#allocation21], %s3576_s29, %s3576_s29, %s3577_s0  }
  0xc8   : > { %p4520_p13 = scmp.ne.s32.totalorder %s4514_s7, 0 }
  0xc9   : > { %p4521_p4 = scmp.eq.s32.totalorder (!%p4520_p13), %s3740_s4, 0 }
  0xca   : > { %736 = sbr.rel (%p4520_p13) target bundleno = 2045 (0x7fd), region = 108 }
  0xd1   : > { %3539 = dma.done.wait (%p4521_p4), [#allocation12], 1024   ;;  %p4522_p0 = pmov %p4521_p4 }
  0xd3   : > { %3541 = vsyncadd (%p4522_p0), [#allocation12], 4294966272  ;;  %p4523_p9 = pmov %p4522_p0 }
  0xd4   : > { %p4524_p10 = pmov %p4522_p0 }
  0xd5   : > { %3543 = dma.done.wait (%p4523_p9), [#allocation15], 2048  }
  0xd6   : > { %3545 = vsyncadd (%p4524_p10), [#allocation15], 4294965248  ;;  %p4525_p11 = pmov %p4522_p0 }
  0xd7   : > { %p4526_p2 = pmov %p4522_p0 }
  0xd8   : > { %3547 = dma.done.wait (%p4525_p11), [#allocation18], 6144  }
  0xd9   : > { %3549 = vsyncadd (%p4526_p2), [#allocation18], 4294961152  ;;  %p4527_p1 = pmov %p4522_p0 }
  0xda   : > { %p4528_p3 = pmov %p4522_p0 }
  0xdb   : > { %3551 = dma.done.wait (%p4527_p1), [#allocation21], 2048  }
  0xdc   : > { %3553 = vsyncadd (%p4528_p3), [#allocation21], 4294965248  ;;  %s2596_s7 = sshll.u32 %s3740_s4, 4  ;;  %s4529_s0 = sld [smem:[#allocation36_spill]] }
  0xdd   : > { %p818_p5 = scmp.lt.s32.totalorder %s2596_s7, 31  ;;  %p4530_p12 = scmp.ne.s32.totalorder %s3740_s4, 0 }
  0xde   : > { %v835_v0 = vld [vmem:[#allocation14] sm:$0xff] (!%p4530_p12)  ;;  %v836_v1 = vld [vmem:[#allocation14 + $0x8] sm:$0xff] (!%p4530_p12)  ;;  %v837_v2 = vld [vmem:[#allocation14 + $0x10] sm:$0xff] (!%p4530_p12)  ;;  %vm850_vm0 = vcmask (!%p4530_p12), 523264   ;;  %v3580_v20 = vmov (!%p4530_p12), -1e+30  }
  0xdf   : > { %s4542_s7 = smov (!%p818_p5, %s2596_s7), 31  ;;  %826 = sbr.rel (%p4530_p12) target bundleno = 462 (0x1ce), region = 136 }
  0xe0   : > { %s2597_s5 = sshll.u32 %s4542_s7, 3  ;;  %v2923_v3 = vpack.c.bf16 (!%p4530_p12), %v836_v1, %v835_v0  ;;  %v838_v4 = vld [vmem:[#allocation14 + $0x18] sm:$0xff] (!%p4530_p12)  ;;  %v839_v6 = vld [vmem:[#allocation14 + $0x20] sm:$0xff] (!%p4530_p12)  ;;  %v840_v7 = vld [vmem:[#allocation14 + $0x28] sm:$0xff] (!%p4530_p12)  ;;  %988 = vst [vmem:[#allocation4] sm:$0xff] (!%p4530_p12), %v3580_v20  ;;  %v3581_v21 = vmov (!%p4530_p12), 0.0  }
  0xe1   : > { %v2927_v5 = vpack.c.bf16 (!%p4530_p12), %v838_v4, %v837_v2  ;;  %v827_v8 = vld [vmem:[#allocation11] sm:$0xff] (!%p4530_p12)  ;;  %v2931_v10 = vpack.c.bf16 (!%p4530_p12), %v840_v7, %v839_v6  ;;  %v841_v11 = vld [vmem:[#allocation14 + $0x30] sm:$0xff] (!%p4530_p12)  ;;  %v842_v12 = vld [vmem:[#allocation14 + $0x38] sm:$0xff] (!%p4530_p12)  ;;  %989 = vst [vmem:[#allocation4 + $0x8] sm:$0xff] (!%p4530_p12), %v3580_v20  ;;  %s4531_s26 = sld [smem:[#allocation38_spill]] (!%p4530_p12) }
  0xe2   : > { %s3936_s9 = scalar_lea.vmem %s4529_s0, %s2597_s5  ;;  %2924 = vmatprep.subr.bf16.mxu0 (!%p4530_p12), %v2923_v3  ;;  %3083 = vmatprep.subr.bf16.mxu1 (!%p4530_p12), %v2923_v3  ;;  %v831_v9 = vld [vmem:[#allocation11 + $0x20] sm:$0xff] (!%p4530_p12)  ;;  %v2935_v13 = vpack.c.bf16 (!%p4530_p12), %v842_v12, %v841_v11  ;;  %v828_v14 = vld [vmem:[#allocation11 + $0x8] sm:$0xff] (!%p4530_p12)  ;;  %v829_v16 = vld [vmem:[#allocation11 + $0x10] sm:$0xff] (!%p4530_p12)  ;;  %990 = vst [vmem:[#allocation4 + $0x10] sm:$0xff] (!%p4530_p12), %v3580_v20 }
  0xe3   : > { %2926 = vmatpush3.bf16.msra.mxu0 (!%p4530_p12), %v2923_v3  ;;  %3087 = vmatpush3.bf16.msra.mxu1 (!%p4530_p12), %v2923_v3  ;;  %v832_v15 = vld [vmem:[#allocation11 + $0x28] sm:$0xff] (!%p4530_p12)  ;;  %v833_v17 = vld [vmem:[#allocation11 + $0x30] sm:$0xff] (!%p4530_p12)  ;;  %v830_v18 = vld [vmem:[#allocation11 + $0x18] sm:$0xff] (!%p4530_p12)  ;;  %991 = vst [vmem:[#allocation4 + $0x18] sm:$0xff] (!%p4530_p12), %v3580_v20 }
  0xe4   : > { %2928 = vmatprep.subr.bf16.mxu0 (!%p4530_p12), %v2927_v5  ;;  %3084 = vmatprep.subr.bf16.mxu1 (!%p4530_p12), %v2927_v5  ;;  %v834_v19 = vld [vmem:[#allocation11 + $0x38] sm:$0xff] (!%p4530_p12)  ;;  %992 = vst [vmem:[#allocation4 + $0x20] sm:$0xff] (!%p4530_p12), %v3580_v20  ;;  %993 = vst [vmem:[#allocation4 + $0x28] sm:$0xff] (!%p4530_p12), %v3580_v20 }
  0xe5   : > { %2795 = vmatprep.mubr.msk.f32.mxu0 (!%p4530_p12), %vm850_vm0, %v827_v8  ;;  %2801 = vmatprep.mubr.msk.f32.mxu1 (!%p4530_p12), %vm850_vm0, %v831_v9  ;;  %994 = vst [vmem:[#allocation4 + $0x30] sm:$0xff] (!%p4530_p12), %v3580_v20  ;;  %995 = vst [vmem:[#allocation4 + $0x38] sm:$0xff] (!%p4530_p12), %v3580_v20 }
  0xe6   : > { %996 = vst [vmem:[#allocation5] sm:$0xff] %v3581_v21  ;;  %997 = vst [vmem:[#allocation5 + $0x8] sm:$0xff] %v3581_v21 }
  0xe7   : > { %2930 = vmatpush3.bf16.msra.mxu0 %v2927_v5  ;;  %3088 = vmatpush3.bf16.msra.mxu1 %v2927_v5  ;;  %998 = vst [vmem:[#allocation5 + $0x10] sm:$0xff] %v3581_v21  ;;  %999 = vst [vmem:[#allocation5 + $0x18] sm:$0xff] %v3581_v21  ;;  %v2599_v22 = vld [vmem:[%s4531_s26] ss:$0 sm:$0xff] }
  0xe8   : > { %2932 = vmatprep.subr.bf16.mxu0 %v2931_v10  ;;  %3085 = vmatprep.subr.bf16.mxu1 %v2931_v10  ;;  %1000 = vst [vmem:[#allocation5 + $0x20] sm:$0xff] %v3581_v21  ;;  %1001 = vst [vmem:[#allocation5 + $0x28] sm:$0xff] %v3581_v21 }
  0xe9   : > { %1002 = vst [vmem:[#allocation5 + $0x30] sm:$0xff] %v3581_v21  ;;  %1003 = vst [vmem:[#allocation5 + $0x38] sm:$0xff] %v3581_v21 }
  0xea   : > { %1004 = vst [vmem:[#allocation6] sm:$0xff] %v3581_v21  ;;  %1005 = vst [vmem:[#allocation6 + $0x8] sm:$0xff] %v3581_v21 }
  0xeb   : > { %2934 = vmatpush3.bf16.msra.mxu0 %v2931_v10  ;;  %3089 = vmatpush3.bf16.msra.mxu1 %v2931_v10  ;;  %1006 = vst [vmem:[#allocation6 + $0x10] sm:$0xff] %v3581_v21  ;;  %1007 = vst [vmem:[#allocation6 + $0x18] sm:$0xff] %v3581_v21 }
  0xec   : > { %2936 = vmatprep.subr.bf16.mxu0 %v2935_v13  ;;  %3086 = vmatprep.subr.bf16.mxu1 %v2935_v13  ;;  %1008 = vst [vmem:[#allocation6 + $0x20] sm:$0xff] %v3581_v21  ;;  %1009 = vst [vmem:[#allocation6 + $0x28] sm:$0xff] %v3581_v21 }
  0xed   : > { %1010 = vst [vmem:[#allocation6 + $0x30] sm:$0xff] %v3581_v21  ;;  %1011 = vst [vmem:[#allocation6 + $0x38] sm:$0xff] %v3581_v21 }
  0xef   : > { %2938 = vmatpush3.bf16.msra.mxu0 %v2935_v13  ;;  %3090 = vmatpush3.bf16.msra.mxu1 %v2935_v13 }
  0xf2   : > { %2796 = vmatmul.mubr.msk.f32.vlgmr.msra.gmra.mrb[0].mxu0 %vm850_vm0, %v828_v14  ;;  %2802 = vmatmul.mubr.msk.f32.vlgmr.msra.gmra.mrb[0].mxu1 %vm850_vm0, %v832_v15 }
  0xf3   : > { %2798 = vmatprep.mubr.msk.f32.mxu0 %vm850_vm0, %v829_v16  ;;  %2804 = vmatprep.mubr.msk.f32.mxu1 %vm850_vm0, %v833_v17 }
  0xf6   : > { %2799 = vmatmul.mubr.msk.f32.gmra.mrb[2].mxu0 %vm850_vm0, %v830_v18  ;;  %2805 = vmatmul.mubr.msk.f32.gmra.mrb[2].mxu1 %vm850_vm0, %v834_v19 }
 0x1c5   : > { %v2797_v23 = vpop.f32.mrb[0].mxu0  ;;  %v2803_v24 = vpop.f32.mrb[0].mxu1 }
 0x1c6   : > { %v947_v25 = vadd.f32 %v2797_v23, %v2599_v22  ;;  %v967_v26 = vadd.f32 %v2803_v24, %v2599_v22  ;;  %v941_v27 = vpop.f32.mrb[1].mxu0  ;;  %v961_v28 = vpop.f32.mrb[1].mxu1 }
 0x1c7   : > { %v942_v29 = vadd.f32 %v2599_v22, %v941_v27  ;;  %v962_v30 = vadd.f32 %v2599_v22, %v961_v28 }
 0x1c8   : > { %981 = vst [vmem:[#allocation2 + $0x8] sm:$0xff] %v947_v25  ;;  %985 = vst [vmem:[#allocation2 + $0x28] sm:$0xff] %v967_v26 }
 0x1c9   : > { %980 = vst [vmem:[#allocation2] sm:$0xff] %v942_v29  ;;  %984 = vst [vmem:[#allocation2 + $0x20] sm:$0xff] %v962_v30  ;;  %v2800_v31 = vpop.f32.mrb[2].mxu0  ;;  %v2806_v32 = vpop.f32.mrb[2].mxu1 }
 0x1ca   : > { %v957_v33 = vadd.f32 %v2800_v31, %v2599_v22  ;;  %v977_v34 = vadd.f32 %v2806_v32, %v2599_v22  ;;  %v951_v35 = vpop.f32.mrb[3].mxu0  ;;  %v971_v36 = vpop.f32.mrb[3].mxu1 }
 0x1cb   : > { %v952_v37 = vadd.f32 %v2599_v22, %v951_v35  ;;  %v972_v38 = vadd.f32 %v2599_v22, %v971_v36 }
 0x1cc   : > { %983 = vst [vmem:[#allocation2 + $0x18] sm:$0xff] %v957_v33  ;;  %987 = vst [vmem:[#allocation2 + $0x38] sm:$0xff] %v977_v34 }
 0x1cd   : > { %982 = vst [vmem:[#allocation2 + $0x10] sm:$0xff] %v952_v37  ;;  %986 = vst [vmem:[#allocation2 + $0x30] sm:$0xff] %v972_v38 }
 0x1ce PF: > { %v1014_v39 = vld [vmem:[%s3936_s9 + $0x10] sm:$0xff]  ;;  %v1012_v40 = vld [vmem:[%s3936_s9] sm:$0xff]  ;;  %v3582_v41 = vmov 0   ;;  %v1015_v42 = vld [vmem:[%s3936_s9 + $0x18] sm:$0xff]  ;;  %v3583_v56 = vmov 1   ;;  %s3967_s20 = sld [smem:[#allocation10]] }
 0x1cf   : > { %3201 = vset.pattern.permute.xlu1 %v3582_v41  ;;  %3200 = vset.pattern.permute.xlu0 %v3582_v41  ;;  %v1013_v43 = vld [vmem:[%s3936_s9 + $0x8] sm:$0xff]  ;;  %v1016_v45 = vld [vmem:[%s3936_s9 + $0x20] sm:$0xff]  ;;  %v1019_v46 = vld [vmem:[%s3936_s9 + $0x38] sm:$0xff]  ;;  %s2611_s2 = sshll.u32 %s3740_s4, 7  ;;  %s4532_s27 = sld [smem:[#allocation39_spill]] }
 0x1d0   : > { %1049 = vperm.xlu1 %3201, %v1014_v39   ;;  %1039 = vperm.xlu0 %3200, %v1012_v40   ;;  %v1017_v44 = vld [vmem:[%s3936_s9 + $0x28] sm:$0xff]  ;;  %v1018_v47 = vld [vmem:[%s3936_s9 + $0x30] sm:$0xff]  ;;  %v1020_v49 = vld [vmem:[%s3936_s9 + $0x40] sm:$0xff]  ;;  %s4533_s30 = sld [smem:[#allocation40_spill]]  ;;  %s4045_s5 = smov 0  }
 0x1d1   : > { %v1021_v48 = vld [vmem:[%s3936_s9 + $0x48] sm:$0xff]  ;;  %v1023_v50 = vld [vmem:[%s3936_s9 + $0x58] sm:$0xff]  ;;  %v1022_v51 = vld [vmem:[%s3936_s9 + $0x50] sm:$0xff] }
 0x1d2   : > { %v1025_v52 = vld [vmem:[%s3936_s9 + $0x68] sm:$0xff]  ;;  %v1024_v53 = vld [vmem:[%s3936_s9 + $0x60] sm:$0xff]  ;;  %v1027_v54 = vld [vmem:[%s3936_s9 + $0x78] sm:$0xff] }
 0x1d3   : > { %v1026_v55 = vld [vmem:[%s3936_s9 + $0x70] sm:$0xff] }
 0x1d4   : > { %1054 = vperm.xlu1 %3201, %v1015_v42   ;;  %1044 = vperm.xlu0 %3200, %v1013_v43  }
 0x1d5   : > { %v3977_v7 = vld [vmem:[%s4532_s27] ss:$0 sm:$0xff]  ;;  %v3993_v13 = vld [vmem:[%s4532_s27 + $0x1] ss:$0 sm:$0xff] }
 0x1d6   : > { %v3987_v11 = vld [vmem:[%s4533_s30] ss:$0 sm:$0xff] }
 0x1d8   : > { %1064 = vperm.xlu1 %3201, %v1017_v44   ;;  %1059 = vperm.xlu0 %3200, %v1016_v45  }
 0x1dc   : > { %1074 = vperm.xlu1 %3201, %v1019_v46   ;;  %1069 = vperm.xlu0 %3200, %v1018_v47  }
 0x1e0   : > { %1084 = vperm.xlu1 %3201, %v1021_v48   ;;  %1079 = vperm.xlu0 %3200, %v1020_v49  }
 0x1e4   : > { %1094 = vperm.xlu1 %3201, %v1023_v50   ;;  %1089 = vperm.xlu0 %3200, %v1022_v51  }
 0x1e8   : > { %1104 = vperm.xlu1 %3201, %v1025_v52   ;;  %1099 = vperm.xlu0 %3200, %v1024_v53  }
 0x1ec   : > { %1114 = vperm.xlu1 %3201, %v1027_v54   ;;  %1109 = vperm.xlu0 %3200, %v1026_v55  }
 0x1f0   : > { %3203 = vset.pattern.permute.xlu1 %v3583_v56  ;;  %3202 = vset.pattern.permute.xlu0 %v3583_v56 }
 0x1f1   : > { %1159 = vperm.xlu1 %3203, %v1013_v43   ;;  %1155 = vperm.xlu0 %3202, %v1012_v40  }
 0x1f5   : > { %1163 = vperm.xlu1 %3203, %v1014_v39   ;;  %1167 = vperm.xlu0 %3202, %v1015_v42  }
 0x1f9   : > { %1171 = vperm.xlu1 %3203, %v1016_v45   ;;  %1175 = vperm.xlu0 %3202, %v1017_v44  }
 0x1fd   : > { %1179 = vperm.xlu1 %3203, %v1018_v47   ;;  %1183 = vperm.xlu0 %3202, %v1019_v46  }
 0x201   : > { %1187 = vperm.xlu1 %3203, %v1020_v49   ;;  %1191 = vperm.xlu0 %3202, %v1021_v48  }
 0x205   : > { %1195 = vperm.xlu1 %3203, %v1022_v51   ;;  %1199 = vperm.xlu0 %3202, %v1023_v50  }
 0x209   : > { %1203 = vperm.xlu1 %3203, %v1024_v53   ;;  %1207 = vperm.xlu0 %3202, %v1025_v52  }
 0x20d   : > { %1211 = vperm.xlu1 %3203, %v1026_v55   ;;  %1215 = vperm.xlu0 %3202, %v1027_v54  }
 0x24f   : > { %v1050_v57 = vpop.permute.xlu1 %1049  ;;  %v1040_v58 = vpop.permute.xlu0 %1039 }
 0x250   : > { %v1121_v10 = vmul.f32 %v3977_v7, %v1040_v58  ;;  %v1123_v14 = vmul.f32 %v3977_v7, %v1050_v57 }
 0x252   : > { %v1137_v15 = vadd.f32 %v3987_v11, %v1121_v10  ;;  %v1139_v28 = vadd.f32 %v3987_v11, %v1123_v14 }
 0x253   : > { %v1055_v59 = vpop.permute.xlu1 %1054  ;;  %v1045_v60 = vpop.permute.xlu0 %1044 }
 0x254   : > { %v1122_v12 = vmul.f32 %v3977_v7, %v1045_v60  ;;  %v1124_v18 = vmul.f32 %v3977_v7, %v1055_v59 }
 0x256   : > { %v1138_v19 = vadd.f32 %v3987_v11, %v1122_v12  ;;  %v1140_v29 = vadd.f32 %v3987_v11, %v1124_v18 }
 0x257   : > { %v1065_v61 = vpop.permute.xlu1 %1064  ;;  %v1060_v62 = vpop.permute.xlu0 %1059 }
 0x258   : > { %v1126_v24 = vmul.f32 %v3977_v7, %v1065_v61  ;;  %v1125_v25 = vmul.f32 %v3977_v7, %v1060_v62 }
 0x25a   : > { %v1142_v34 = vadd.f32 %v3987_v11, %v1126_v24  ;;  %v1141_v35 = vadd.f32 %v3987_v11, %v1125_v25 }
 0x25b   : > { %v1075_v63 = vpop.permute.xlu1 %1074  ;;  %v1070_v0 = vpop.permute.xlu0 %1069 }
 0x25c   : > { %v1128_v38 = vmul.f32 %v3977_v7, %v1075_v63  ;;  %v1127_v39 = vmul.f32 %v3977_v7, %v1070_v0 }
 0x25e   : > { %v1144_v48 = vadd.f32 %v3987_v11, %v1128_v38  ;;  %v1143_v49 = vadd.f32 %v3987_v11, %v1127_v39 }
 0x25f   : > { %v1085_v1 = vpop.permute.xlu1 %1084  ;;  %v1080_v2 = vpop.permute.xlu0 %1079 }
 0x260   : > { %v1130_v44 = vmul.f32 %v3977_v7, %v1085_v1  ;;  %v1129_v45 = vmul.f32 %v3977_v7, %v1080_v2 }
 0x262   : > { %v1146_v54 = vadd.f32 %v3987_v11, %v1130_v44  ;;  %v1145_v55 = vadd.f32 %v3987_v11, %v1129_v45 }
 0x263   : > { %v1095_v3 = vpop.permute.xlu1 %1094  ;;  %v1090_v4 = vpop.permute.xlu0 %1089 }
 0x264   : > { %v1132_v58 = vmul.f32 %v3977_v7, %v1095_v3  ;;  %v1131_v59 = vmul.f32 %v3977_v7, %v1090_v4 }
 0x266   : > { %v1148_v3 = vadd.f32 %v3987_v11, %v1132_v58  ;;  %v1147_v4 = vadd.f32 %v3987_v11, %v1131_v59 }
 0x267   : > { %v3970_v5 = vpop.permute.xlu1 %1104  ;;  %v3972_v6 = vpop.permute.xlu0 %1099 }
 0x268   : > { %v1134_v0 = vmul.f32 %v3977_v7, %v3970_v5  ;;  %v1133_v1 = vmul.f32 %v3977_v7, %v3972_v6 }
 0x26a   : > { %v1149_v5 = vadd.f32 %v3987_v11, %v1133_v1 }
 0x26b   : > { %v3979_v8 = vpop.permute.xlu1 %1114  ;;  %v3981_v9 = vpop.permute.xlu0 %1109 }
 0x270   : > { %v1160_v16 = vpop.permute.xlu1 %1159  ;;  %v1156_v17 = vpop.permute.xlu0 %1155 }
 0x271   : > { %v1223_v20 = vmul.f32 %v3993_v13, %v1160_v16  ;;  %v1222_v21 = vmul.f32 %v3993_v13, %v1156_v17  ;;  %v1150_v17 = vadd.f32 %v3987_v11, %v1134_v0 }
 0x273   : > { %v1239_v22 = vadd.f32 %v1223_v20, %v1138_v19  ;;  %v1238_v23 = vadd.f32 %v1222_v21, %v1137_v15  ;;  %v1136_v19 = vmul.f32 %v3977_v7, %v3979_v8  ;;  %v1135_v20 = vmul.f32 %v3977_v7, %v3981_v9 }
 0x274   : > { %v1164_v26 = vpop.permute.xlu1 %1163  ;;  %v1168_v27 = vpop.permute.xlu0 %1167 }
 0x275   : > { %1255 = vst [vmem:[#allocation3 + $0x8] sm:$0xff] %v1239_v22  ;;  %1254 = vst [vmem:[#allocation3] sm:$0xff] %v1238_v23  ;;  %v1224_v30 = vmul.f32 %v3993_v13, %v1164_v26  ;;  %v1225_v31 = vmul.f32 %v3993_v13, %v1168_v27  ;;  %v1152_v27 = vadd.f32 %v3987_v11, %v1136_v19 }
 0x277   : > { %v1240_v32 = vadd.f32 %v1224_v30, %v1139_v28  ;;  %v1241_v33 = vadd.f32 %v1225_v31, %v1140_v29  ;;  %v1151_v28 = vadd.f32 %v3987_v11, %v1135_v20 }
 0x278   : > { %v1172_v36 = vpop.permute.xlu1 %1171  ;;  %v1176_v37 = vpop.permute.xlu0 %1175 }
 0x279   : > { %1256 = vst [vmem:[#allocation3 + $0x10] sm:$0xff] %v1240_v32  ;;  %1257 = vst [vmem:[#allocation3 + $0x18] sm:$0xff] %v1241_v33  ;;  %v1226_v40 = vmul.f32 %v3993_v13, %v1172_v36  ;;  %v1227_v41 = vmul.f32 %v3993_v13, %v1176_v37 }
 0x27b   : > { %v1242_v42 = vadd.f32 %v1226_v40, %v1141_v35  ;;  %v1243_v43 = vadd.f32 %v1227_v41, %v1142_v34 }
 0x27c   : > { %v1180_v46 = vpop.permute.xlu1 %1179  ;;  %v1184_v47 = vpop.permute.xlu0 %1183 }
 0x27d   : > { %1258 = vst [vmem:[#allocation3 + $0x20] sm:$0xff] %v1242_v42  ;;  %1259 = vst [vmem:[#allocation3 + $0x28] sm:$0xff] %v1243_v43  ;;  %v1228_v50 = vmul.f32 %v3993_v13, %v1180_v46  ;;  %v1229_v51 = vmul.f32 %v3993_v13, %v1184_v47 }
 0x27f   : > { %v1244_v52 = vadd.f32 %v1228_v50, %v1143_v49  ;;  %v1245_v53 = vadd.f32 %v1229_v51, %v1144_v48 }
 0x280   : > { %v1188_v56 = vpop.permute.xlu1 %1187  ;;  %v1192_v57 = vpop.permute.xlu0 %1191 }
 0x281   : > { %1260 = vst [vmem:[#allocation3 + $0x30] sm:$0xff] %v1244_v52  ;;  %1261 = vst [vmem:[#allocation3 + $0x38] sm:$0xff] %v1245_v53  ;;  %v1230_v60 = vmul.f32 %v3993_v13, %v1188_v56  ;;  %v1231_v61 = vmul.f32 %v3993_v13, %v1192_v57 }
 0x283   : > { %v1246_v62 = vadd.f32 %v1230_v60, %v1145_v55  ;;  %v1247_v63 = vadd.f32 %v1231_v61, %v1146_v54 }
 0x284   : > { %v1196_v2 = vpop.permute.xlu1 %1195  ;;  %v1200_v10 = vpop.permute.xlu0 %1199 }
 0x285   : > { %1262 = vst [vmem:[#allocation3 + $0x40] sm:$0xff] %v1246_v62  ;;  %1263 = vst [vmem:[#allocation3 + $0x48] sm:$0xff] %v1247_v63  ;;  %v1232_v12 = vmul.f32 %v3993_v13, %v1196_v2  ;;  %v1233_v14 = vmul.f32 %v3993_v13, %v1200_v10 }
 0x287   : > { %v1248_v15 = vadd.f32 %v1232_v12, %v1147_v4  ;;  %v1249_v16 = vadd.f32 %v1233_v14, %v1148_v3 }
 0x288   : > { %v1204_v18 = vpop.permute.xlu1 %1203  ;;  %v1208_v6 = vpop.permute.xlu0 %1207 }
 0x289   : > { %1264 = vst [vmem:[#allocation3 + $0x50] sm:$0xff] %v1248_v15  ;;  %1265 = vst [vmem:[#allocation3 + $0x58] sm:$0xff] %v1249_v16  ;;  %v1234_v21 = vmul.f32 %v3993_v13, %v1204_v18  ;;  %v1235_v22 = vmul.f32 %v3993_v13, %v1208_v6 }
 0x28b   : > { %v1250_v23 = vadd.f32 %v1234_v21, %v1149_v5  ;;  %v1251_v24 = vadd.f32 %v1235_v22, %v1150_v17 }
 0x28c   : > { %v1212_v25 = vpop.permute.xlu1 %1211  ;;  %v1216_v26 = vpop.permute.xlu0 %1215 }
 0x28d   : > { %1266 = vst [vmem:[#allocation3 + $0x60] sm:$0xff] %v1250_v23  ;;  %1267 = vst [vmem:[#allocation3 + $0x68] sm:$0xff] %v1251_v24  ;;  %v1236_v8 = vmul.f32 %v3993_v13, %v1212_v25  ;;  %v1237_v7 = vmul.f32 %v3993_v13, %v1216_v26 }
 0x28f   : > { %v1252_v9 = vadd.f32 %v1236_v8, %v1151_v28  ;;  %v1253_v29 = vadd.f32 %v1237_v7, %v1152_v27 }
 0x291   : > { %1268 = vst [vmem:[#allocation3 + $0x70] sm:$0xff] %v1252_v9  ;;  %1269 = vst [vmem:[#allocation3 + $0x78] sm:$0xff] %v1253_v29 }
 0x292 LB: >> { %s1278_s12 = sadd.s32 %s3568_s5, %s2611_s2  ;;  %s3568_s5 = sphi %s4045_s5, %s1277_s5  }
 0x293   : >> { %p2612_p6 = scmp.ge.s32.totalorder %s1278_s12, 200 }
 0x294   : >> { %s1283_s29 = sld [smem:[#allocation8 + %s1278_s12]] (!%p2612_p6)  ;;  %s1287_s9 = scalar_lea.vmem (!%p2612_p6), [#allocation3], %s3568_s5  ;;  %v1292_v32 = vstv (!%p2612_p6), %s3967_s20 }
 0x295   : >> { %1282 = sbr.rel (%p2612_p6) target bundleno = 699 (0x2bb), region = 147  ;;  %s4053_s0 = sld [smem:[#allocation9 + %s1278_s12]] (!%p2612_p6) }
 0x298   : >> { %v1288_v11 = vld [vmem:[%s1287_s9] sm:$0x1] (!%p2612_p6) }
 0x29a   : >> { %s1285_s11 = scalar_lea.vmem (!%p2612_p6), [#allocation2], %s1283_s29 }
 0x29b   : >> { %v1286_v13 = vld [vmem:[%s1285_s11] sm:$0x1] (!%p2612_p6)  ;;  %s1294_s1 = scalar_lea.vmem (!%p2612_p6), [#allocation4], %s4053_s0  ;;  %s1303_s26 = scalar_lea.vmem (!%p2612_p6), [#allocation5], %s4053_s0 }
 0x29c   : >> { %v1289_v30 = vadd.f32 %v1288_v11, %v1286_v13  ;;  %v1295_v34 = vld [vmem:[%s1294_s1] sm:$0x1]  ;;  %s1308_s10 = scalar_lea.vmem [#allocation6], %s4053_s0 }
 0x29d   : >> { %v1304_v41 = vld [vmem:[%s1303_s26] sm:$0x1] }
 0x29e   : >> { %v1290_v31 = vmax.f32 %v1289_v30, 0.0  ;;  %v1309_v42 = vld [vmem:[%s1308_s10] sm:$0x1] }
 0x2a0   : >> { %v1291_v33 = vadd.f32 1e-07, %v1290_v31 }
 0x2a2   : >> { %v1293_v35 = vmul.f32 %v1292_v32, %v1291_v33 }
 0x2a4   : >> { %v1296_v36 = vmax.f32 %v1295_v34, %v1293_v35 }
 0x2a6   : >> { %v1297_v37 = vsub.f32 %v1295_v34, %v1296_v36  ;;  %v1300_v38 = vsub.f32 %v1293_v35, %v1296_v36  ;;  %1314 = vst [vmem:[%s1294_s1] sm:$0x1] %v1296_v36 }
 0x2a8   : >> { %v1298_v39 = vmul.f32 1.442695, %v1297_v37  ;;  %v1301_v40 = vmul.f32 1.442695, %v1300_v38 }
 0x2aa   : >> { %3204 = vpow2.f32 %v1298_v39 }
 0x2ab   : >> { %3206 = vpow2.f32 %v1301_v40 }
 0x2b4   : >> { %v3205_v43 = vpop.eup %3204 }
 0x2b5   : >> { %v3207_v44 = vpop.eup %3206  ;;  %v1305_v45 = vmul.f32 %v3205_v43, %v1304_v41  ;;  %v1310_v46 = vmul.f32 %v3205_v43, %v1309_v42 }
 0x2b6   : >> { %v1311_v47 = vmul.f32 %v3207_v44, %v1291_v33 }
 0x2b7   : >> { %v1306_v48 = vadd.f32 %v3207_v44, %v1305_v45 }
 0x2b8   : >> { %v1312_v49 = vadd.f32 %v1311_v47, %v1310_v46 }
 0x2b9   : >> { %1307 = vst [vmem:[%s1303_s26] sm:$0x1] %v1306_v48 }
 0x2ba   : >> { %1313 = vst [vmem:[%s1308_s10] sm:$0x1] %v1312_v49 }
 0x2bb PF: >> { %s1277_s5 = sadd.s32 1, %s3568_s5  }
 0x2bc   : >> { %p1274_p7 = scmp.ge.s32.totalorder %s1277_s5, 128  }
 0x2bd   : > { %p2613_p8 = scmp.ne.s32.totalorder (%p1274_p7), %s3740_s4, 1 }
 0x2be   : > { %1276 = sbr.rel (!%p1274_p7) target bundleno = 658 (0x292), region = 200 }
 0x2c5   : > { %1318 = sbr.rel (%p2613_p8) target bundleno = 1961 (0x7a9), region = 151  ;;  %v1383_v50 = vld [vmem:[#allocation16] sm:$0xff] (!%p2613_p8)  ;;  %v1384_v51 = vld [vmem:[#allocation16 + $0x8] sm:$0xff] (!%p2613_p8)  ;;  %v1385_v52 = vld [vmem:[#allocation16 + $0x10] sm:$0xff] (!%p2613_p8)  ;;  %vm1391_vm1 = vcmask (!%p2613_p8), 523264   ;;  %s4534_s8 = sld [smem:[#allocation43_spill]] (!%p2613_p8) }
 0x2c6   : > { %v2939_v53 = vpack.c.bf16 (!%p2613_p8), %v1384_v51, %v1383_v50  ;;  %v1386_v54 = vld [vmem:[#allocation16 + $0x18] sm:$0xff] (!%p2613_p8)  ;;  %v1387_v56 = vld [vmem:[#allocation16 + $0x20] sm:$0xff] (!%p2613_p8)  ;;  %v1388_v57 = vld [vmem:[#allocation16 + $0x28] sm:$0xff] (!%p2613_p8)  ;;  %s4535_s24 = sld [smem:[#allocation42_spill]] (!%p2613_p8)  ;;  %s4536_s5 = sld [smem:[#allocation44_spill]] (!%p2613_p8) }
 0x2c7   : > { %v2943_v55 = vpack.c.bf16 (!%p2613_p8), %v1386_v54, %v1385_v52  ;;  %v1375_v58 = vld [vmem:[#allocation11] sm:$0xff] (!%p2613_p8)  ;;  %v1389_v59 = vld [vmem:[#allocation16 + $0x30] sm:$0xff] (!%p2613_p8)  ;;  %v2947_v60 = vpack.c.bf16 (!%p2613_p8), %v1388_v57, %v1387_v56  ;;  %v1390_v61 = vld [vmem:[#allocation16 + $0x38] sm:$0xff] (!%p2613_p8)  ;;  %v3584_v54 = vmov (!%p2613_p8), 0.0   ;;  %s4537_s30 = sld [smem:[#allocation45_spill]] (!%p2613_p8) }
 0x2c8   : > { %2940 = vmatprep.subr.bf16.mxu0 (!%p2613_p8), %v2939_v53  ;;  %2823 = vmatprep.mubr.msk.f32.mxu0 (!%p2613_p8), %vm1391_vm1, %v1375_v58  ;;  %v2951_v5 = vpack.c.bf16 (!%p2613_p8), %v1390_v61, %v1389_v59  ;;  %v1376_v8 = vld [vmem:[#allocation11 + $0x8] sm:$0xff] (!%p2613_p8)  ;;  %v1377_v7 = vld [vmem:[#allocation11 + $0x10] sm:$0xff] (!%p2613_p8)  ;;  %v1378_v32 = vld [vmem:[#allocation11 + $0x18] sm:$0xff] (!%p2613_p8) }
 0x2c9   : > { %2942 = vmatpush3.bf16.msra.mxu0 (!%p2613_p8), %v2939_v53  ;;  %v1379_v33 = vld [vmem:[#allocation11 + $0x20] sm:$0xff] (!%p2613_p8)  ;;  %v1380_v40 = vld [vmem:[#allocation11 + $0x28] sm:$0xff] (!%p2613_p8)  ;;  %v1381_v41 = vld [vmem:[#allocation11 + $0x30] sm:$0xff] (!%p2613_p8)  ;;  %1652 = vmatprep.mubr.f32.mxu1 (!%p2613_p8), %v3584_v54 }
 0x2ca   : > { %2944 = vmatprep.subr.bf16.mxu0 (!%p2613_p8), %v2943_v55  ;;  %v1382_v46 = vld [vmem:[#allocation11 + $0x38] sm:$0xff] (!%p2613_p8)  ;;  %v1848_v56 = vld [vmem:[#allocation17 + $0x88] sm:$0xff] (!%p2613_p8)  ;;  %v1831_v57 = vld [vmem:[#allocation17] sm:$0xff] (!%p2613_p8) }
 0x2cb   : > { %v1545_v62 = vld [vmem:[%s4534_s8 + $0x8] sm:$0xff] (!%p2613_p8)  ;;  %v1547_v63 = vld [vmem:[%s4534_s8 + $0x18] sm:$0xff] (!%p2613_p8)  ;;  %v1544_v1 = vld [vmem:[%s4534_s8] sm:$0xff] (!%p2613_p8) }
 0x2cc   : > { %v2955_v0 = vpack.c.bf16 %v1547_v63, %v1545_v62  ;;  %v1546_v2 = vld [vmem:[%s4534_s8 + $0x10] sm:$0xff]  ;;  %v1549_v10 = vld [vmem:[%s4534_s8 + $0x28] sm:$0xff]  ;;  %v1551_v4 = vld [vmem:[%s4534_s8 + $0x38] sm:$0xff] }
 0x2cd   : > { %v2957_v3 = vpack.c.bf16 %v1546_v2, %v1544_v1  ;;  %v1548_v12 = vld [vmem:[%s4534_s8 + $0x20] sm:$0xff]  ;;  %v1550_v14 = vld [vmem:[%s4534_s8 + $0x30] sm:$0xff]  ;;  %2946 = vmatpush3.bf16.msra.mxu0 %v2943_v55  ;;  %v2959_v15 = vpack.c.bf16 %v1551_v4, %v1549_v10  ;;  %v1553_v16 = vld [vmem:[%s4534_s8 + $0x48] sm:$0xff] }
 0x2ce   : > { %2956 = vmatprep.subr.bf16.mxu1 %v2955_v0  ;;  %v1555_v17 = vld [vmem:[%s4534_s8 + $0x58] sm:$0xff]  ;;  %2948 = vmatprep.subr.bf16.mxu0 %v2947_v60  ;;  %v2961_v18 = vpack.c.bf16 %v1550_v14, %v1548_v12  ;;  %v1552_v19 = vld [vmem:[%s4534_s8 + $0x40] sm:$0xff]  ;;  %v1554_v20 = vld [vmem:[%s4534_s8 + $0x50] sm:$0xff] }
 0x2cf   : > { %2958 = vmatpush1.bf16.msra.mxu1 %v2957_v3  ;;  %v2963_v6 = vpack.c.bf16 %v1555_v17, %v1553_v16  ;;  %v1557_v21 = vld [vmem:[%s4534_s8 + $0x68] sm:$0xff]  ;;  %v1559_v22 = vld [vmem:[%s4534_s8 + $0x78] sm:$0xff]  ;;  %v2965_v23 = vpack.c.bf16 %v1554_v20, %v1552_v19  ;;  %v1556_v25 = vld [vmem:[%s4534_s8 + $0x60] sm:$0xff] }
 0x2d0   : > { %2960 = vmatprep.subr.bf16.mxu1 %v2959_v15  ;;  %v2967_v24 = vpack.c.bf16 %v1559_v22, %v1557_v21  ;;  %v1558_v26 = vld [vmem:[%s4534_s8 + $0x70] sm:$0xff]  ;;  %v1561_v27 = vld [vmem:[%s4534_s8 + $0x88] sm:$0xff]  ;;  %v1563_v28 = vld [vmem:[%s4534_s8 + $0x98] sm:$0xff] }
 0x2d1   : > { %2950 = vmatpush3.bf16.msra.mxu0 %v2947_v60  ;;  %v2969_v9 = vpack.c.bf16 %v1558_v26, %v1556_v25  ;;  %v2971_v29 = vpack.c.bf16 %v1563_v28, %v1561_v27  ;;  %v1560_v11 = vld [vmem:[%s4534_s8 + $0x80] sm:$0xff]  ;;  %v1562_v13 = vld [vmem:[%s4534_s8 + $0x90] sm:$0xff]  ;;  %v1565_v30 = vld [vmem:[%s4534_s8 + $0xa8] sm:$0xff] }
 0x2d2   : > { %2952 = vmatprep.subr.bf16.mxu0 %v2951_v5  ;;  %v1567_v31 = vld [vmem:[%s4534_s8 + $0xb8] sm:$0xff]  ;;  %v2973_v34 = vpack.c.bf16 %v1562_v13, %v1560_v11  ;;  %v1564_v36 = vld [vmem:[%s4534_s8 + $0xa0] sm:$0xff]  ;;  %v1566_v37 = vld [vmem:[%s4534_s8 + $0xb0] sm:$0xff] }
 0x2d3   : > { %2962 = vmatpush1.bf16.msra.mxu1 %v2961_v18  ;;  %v2975_v35 = vpack.c.bf16 %v1567_v31, %v1565_v30  ;;  %v1569_v38 = vld [vmem:[%s4534_s8 + $0xc8] sm:$0xff]  ;;  %v1571_v39 = vld [vmem:[%s4534_s8 + $0xd8] sm:$0xff]  ;;  %v2977_v42 = vpack.c.bf16 %v1566_v37, %v1564_v36  ;;  %v1568_v44 = vld [vmem:[%s4534_s8 + $0xc0] sm:$0xff] }
 0x2d4   : > { %2964 = vmatprep.subr.bf16.mxu1 %v2963_v6  ;;  %v2979_v43 = vpack.c.bf16 %v1571_v39, %v1569_v38  ;;  %v1570_v45 = vld [vmem:[%s4534_s8 + $0xd0] sm:$0xff]  ;;  %v1573_v48 = vld [vmem:[%s4534_s8 + $0xe8] sm:$0xff]  ;;  %v1575_v49 = vld [vmem:[%s4534_s8 + $0xf8] sm:$0xff] }
 0x2d5   : > { %2954 = vmatpush3.bf16.msra.mxu0 %v2951_v5  ;;  %v2981_v47 = vpack.c.bf16 %v1570_v45, %v1568_v44  ;;  %v2983_v50 = vpack.c.bf16 %v1575_v49, %v1573_v48  ;;  %v1572_v51 = vld [vmem:[%s4534_s8 + $0xe0] sm:$0xff]  ;;  %v1574_v52 = vld [vmem:[%s4534_s8 + $0xf0] sm:$0xff]  ;;  %v1832_v59 = vld [vmem:[#allocation17 + $0x8] sm:$0xff] }
 0x2d6   : > { %v2985_v53 = vpack.c.bf16 %v1574_v52, %v1572_v51  ;;  %v1847_v55 = vld [vmem:[#allocation17 + $0x80] sm:$0xff]  ;;  %v1849_v60 = vld [vmem:[#allocation17 + $0x90] sm:$0xff]  ;;  %v1850_v61 = vld [vmem:[#allocation17 + $0x98] sm:$0xff]  ;;  %v2989_v62 = vpack.c.bf16 %v1832_v59, %v1831_v57 }
 0x2d7   : > { %2966 = vmatpush1.bf16.msra.mxu1 %v2965_v23  ;;  %v2987_v58 = vpack.c.bf16 %v1848_v56, %v1847_v55  ;;  %v2991_v63 = vpack.c.bf16 %v1850_v61, %v1849_v60  ;;  %v1833_v0 = vld [vmem:[#allocation17 + $0x10] sm:$0xff]  ;;  %v1834_v1 = vld [vmem:[#allocation17 + $0x18] sm:$0xff]  ;;  %v1851_v2 = vld [vmem:[#allocation17 + $0xa0] sm:$0xff] }
 0x2d8   : > { %2968 = vmatprep.subr.bf16.mxu1 %v2967_v24  ;;  %2824 = vmatmul.mubr.msk.f32.vlgmr.msra.gmra.mrb[0].mxu0 %vm1391_vm1, %v1376_v8  ;;  %v1852_v10 = vld [vmem:[#allocation17 + $0xa8] sm:$0xff]  ;;  %v2993_v3 = vpack.c.bf16 %v1834_v1, %v1833_v0  ;;  %v1835_v12 = vld [vmem:[#allocation17 + $0x20] sm:$0xff]  ;;  %v1853_v15 = vld [vmem:[#allocation17 + $0xb0] sm:$0xff] }
 0x2d9   : > { %2826 = vmatprep.mubr.msk.f32.mxu0 %vm1391_vm1, %v1377_v7  ;;  %2988 = vmatprep.subr.bf16.mxu0 %v2987_v58  ;;  %v2995_v4 = vpack.c.bf16 %v1852_v10, %v1851_v2  ;;  %v1836_v14 = vld [vmem:[#allocation17 + $0x28] sm:$0xff]  ;;  %v1854_v16 = vld [vmem:[#allocation17 + $0xb8] sm:$0xff]  ;;  %v1837_v18 = vld [vmem:[#allocation17 + $0x30] sm:$0xff] }
 0x2da   : > { %2990 = vmatpush3.bf16.msra.mxu0 %v2989_v62  ;;  %v2997_v17 = vpack.c.bf16 %v1836_v14, %v1835_v12  ;;  %v2999_v5 = vpack.c.bf16 %v1854_v16, %v1853_v15  ;;  %v1838_v6 = vld [vmem:[#allocation17 + $0x38] sm:$0xff]  ;;  %v1855_v19 = vld [vmem:[#allocation17 + $0xc0] sm:$0xff]  ;;  %v1856_v20 = vld [vmem:[#allocation17 + $0xc8] sm:$0xff] }
 0x2db   : > { %2970 = vmatpush1.bf16.msra.mxu1 %v2969_v9  ;;  %2992 = vmatprep.subr.bf16.mxu0 %v2991_v63  ;;  %v3001_v21 = vpack.c.bf16 %v1838_v6, %v1837_v18  ;;  %v3003_v22 = vpack.c.bf16 %v1856_v20, %v1855_v19  ;;  %v1319_v23 = vld [vmem:[#allocation5] sm:$0xff]  ;;  %v1320_v24 = vld [vmem:[#allocation5 + $0x8] sm:$0xff]  ;;  %v1321_v26 = vld [vmem:[#allocation5 + $0x10] sm:$0xff] }
 0x2dc   : > { %2972 = vmatprep.subr.bf16.mxu1 %v2971_v29  ;;  %2827 = vmatmul.mubr.msk.f32.gmra.mrb[2].mxu0 %vm1391_vm1, %v1378_v32  ;;  %v1343_v25 = vmax.f32 %v1319_v23, 1e-16  ;;  %v1344_v27 = vmax.f32 %v1320_v24, 1e-16  ;;  %v1345_v28 = vmax.f32 %v1321_v26, 1e-16 }
 0x2dd   : > { %2829 = vmatprep.mubr.msk.f32.mxu0 %vm1391_vm1, %v1379_v33  ;;  %v1322_v8 = vld [vmem:[#allocation5 + $0x18] sm:$0xff]  ;;  %v1323_v7 = vld [vmem:[#allocation5 + $0x20] sm:$0xff]  ;;  %v4169_v30 = vld [vmem:[#allocation5 + $0x28] sm:$0xff]  ;;  %vm1327_vm2 = vcmp.gt.f32.partialorder %v1319_v23, 0.0  ;;  %vm1328_vm3 = vcmp.gt.f32.partialorder %v1320_v24, 0.0  ;;  %vm1329_vm4 = vcmp.gt.f32.partialorder %v1321_v26, 0.0 }
 0x2de   : > { %2994 = vmatpush3.bf16.msra.mxu0 %v2993_v3  ;;  %3208 = vrcp.f32 %v1343_v25  ;;  %v1346_v9 = vmax.f32 %v1322_v8, 1e-16  ;;  %v1347_v29 = vmax.f32 %v1323_v7, 1e-16  ;;  %v1335_v13 = vld [vmem:[#allocation6] sm:$0xff]  ;;  %v1336_v32 = vld [vmem:[#allocation6 + $0x8] sm:$0xff] }
 0x2df   : > { %2974 = vmatpush1.bf16.msra.mxu1 %v2973_v34  ;;  %2996 = vmatprep.subr.bf16.mxu0 %v2995_v4  ;;  %3210 = vrcp.f32 %v1344_v27  ;;  %v4171_v34 = vld [vmem:[#allocation5 + $0x30] sm:$0xff]  ;;  %v1348_v37 = vmax.f32 %v4169_v30, 1e-16  ;;  %v4178_v44 = vld [vmem:[%s4535_s24] ss:$0 sm:$0xff]  ;;  %v1338_v49 = vld [vmem:[#allocation6 + $0x18] sm:$0xff] }
 0x2e0   : > { %2976 = vmatprep.subr.bf16.mxu1 %v2975_v35  ;;  %2830 = vmatmul.mubr.msk.f32.gmra.mrb[4].mxu0 %vm1391_vm1, %v1380_v40  ;;  %3212 = vrcp.f32 %v1345_v28  ;;  %v1337_v36 = vld [vmem:[#allocation6 + $0x10] sm:$0xff]  ;;  %v1349_v39 = vmax.f32 %v4171_v34, 1e-16  ;;  %v1339_v56 = vld [vmem:[#allocation6 + $0x20] sm:$0xff]  ;;  %vm1330_vm5 = vcmp.gt.f32.partialorder %v1322_v8, 0.0  ;;  %vm1331_vm6 = vcmp.gt.f32.partialorder %v1323_v7, 0.0 }
 0x2e1   : > { %2832 = vmatprep.mubr.msk.f32.mxu0 %vm1391_vm1, %v1381_v41  ;;  %3214 = vrcp.f32 %v1346_v9  ;;  %v1340_v3 = vld [vmem:[#allocation6 + $0x28] sm:$0xff]  ;;  %v1341_v16 = vld [vmem:[#allocation6 + $0x30] sm:$0xff]  ;;  %vm1332_vm7 = vcmp.gt.f32.partialorder %v4169_v30, 0.0  ;;  %vm1333_vm8 = vcmp.gt.f32.partialorder %v4171_v34, 0.0  ;;  %v1342_v23 = vld [vmem:[#allocation6 + $0x38] sm:$0xff] }
 0x2e2   : > { %2998 = vmatpush3.bf16.msra.mxu0 %v2997_v17  ;;  %3216 = vrcp.f32 %v1347_v29  ;;  %v1841_v34 = vld [vmem:[#allocation17 + $0x50] sm:$0xff] }
 0x2e3   : > { %2978 = vmatpush1.bf16.msra.mxu1 %v2977_v42  ;;  %3000 = vmatprep.subr.bf16.mxu0 %v2999_v5  ;;  %3218 = vrcp.f32 %v1348_v37  ;;  %v1859_v37 = vld [vmem:[#allocation17 + $0xe0] sm:$0xff] }
 0x2e4   : > { %2980 = vmatprep.subr.bf16.mxu1 %v2979_v43  ;;  %2833 = vmatmul.mubr.msk.f32.gmra.mrb[6].mxu0 %vm1391_vm1, %v1382_v46  ;;  %v1326_v46 = vld [vmem:[#allocation5 + $0x38] sm:$0xff]  ;;  %3220 = vrcp.f32 %v1349_v39 }
 0x2e5   : > { %v1350_v57 = vmax.f32 %v1326_v46, 1e-16  ;;  %vm1334_vm9 = vcmp.gt.f32.partialorder %v1326_v46, 0.0  ;;  %v1846_v46 = vld [vmem:[#allocation17 + $0x78] sm:$0xff] }
 0x2e6   : > { %3002 = vmatpush3.bf16.msra.mxu0 %v3001_v21 }
 0x2e7   : > { %2982 = vmatpush1.bf16.msra.mxu1 %v2981_v47  ;;  %3004 = vmatprep.subr.bf16.mxu0 %v3003_v22  ;;  %3222 = vrcp.f32 %v1350_v57 }
 0x2e8   : > { %2984 = vmatprep.subr.bf16.mxu1 %v2983_v50  ;;  %v3209_v11 = vpop.eup %3208 }
 0x2e9   : > { %v3211_v31 = vpop.eup %3210  ;;  %v1352_v33 = vmul.f32 %v3209_v11, %v1335_v13  ;;  %v1839_v11 = vld [vmem:[#allocation17 + $0x40] sm:$0xff]  ;;  %v1840_v13 = vld [vmem:[#allocation17 + $0x48] sm:$0xff] }
 0x2ea   : > { %v3213_v35 = vpop.eup %3212  ;;  %v1354_v38 = vmul.f32 %v3211_v31, %v1336_v32  ;;  %v3005_v30 = vpack.c.bf16 %v1840_v13, %v1839_v11  ;;  %v1857_v31 = vld [vmem:[#allocation17 + $0xd0] sm:$0xff]  ;;  %v1858_v32 = vld [vmem:[#allocation17 + $0xd8] sm:$0xff] }
 0x2eb   : > { %2986 = vmatpush1.bf16.msra.mxu1 %v2985_v53  ;;  %v1367_v40 = vsel %vm1327_vm2, %v1352_v33, 0.0  ;;  %v1356_v41 = vmul.f32 %v3213_v35, %v1337_v36  ;;  %v3215_v47 = vpop.eup %3214  ;;  %v3007_v33 = vpack.c.bf16 %v1858_v32, %v1857_v31  ;;  %v1842_v35 = vld [vmem:[#allocation17 + $0x58] sm:$0xff] }
 0x2ec   : > { %v1368_v43 = vsel %vm1328_vm3, %v1354_v38, 0.0  ;;  %v3217_v51 = vpop.eup %3216  ;;  %v1358_v58 = vmul.f32 %v3215_v47, %v1338_v49  ;;  %3006 = vmatpush3.bf16.msra.mxu0 %v3005_v30  ;;  %v3009_v36 = vpack.c.bf16 %v1842_v35, %v1841_v34  ;;  %v1860_v38 = vld [vmem:[#allocation17 + $0xe8] sm:$0xff] }
 0x2ed   : > { %v1369_v50 = vsel %vm1329_vm4, %v1356_v41, 0.0  ;;  %v1360_v61 = vmul.f32 %v3217_v51, %v1339_v56  ;;  %v3219_v2 = vpop.eup %3218  ;;  %3008 = vmatprep.subr.bf16.mxu0 %v3007_v33  ;;  %v3011_v39 = vpack.c.bf16 %v1860_v38, %v1859_v37  ;;  %v1701_v56 = vld [vmem:[%s4472_s15] sm:$0x3] }
 0x2ee   : > { %v1370_v0 = vsel %vm1330_vm5, %v1358_v58, 0.0  ;;  %v3221_v12 = vpop.eup %3220  ;;  %v1362_v17 = vmul.f32 %v3219_v2, %v1340_v3 }
 0x2ef   : > { %v1371_v4 = vsel %vm1331_vm6, %v1360_v61, 0.0  ;;  %v1364_v6 = vmul.f32 %v3221_v12, %v1341_v16 }
 0x2f0   : > { %v1372_v20 = vsel %vm1332_vm7, %v1362_v17, 0.0  ;;  %3010 = vmatpush3.bf16.msra.mxu0 %v3009_v36 }
 0x2f1   : > { %v3223_v21 = vpop.eup %3222  ;;  %v1373_v24 = vsel %vm1333_vm8, %v1364_v6, 0.0  ;;  %3012 = vmatprep.subr.bf16.mxu0 %v3011_v39 }
 0x2f2   : > { %v1366_v26 = vmul.f32 %v3223_v21, %v1342_v23 }
 0x2f4   : > { %v1374_v8 = vsel %vm1334_vm9, %v1366_v26, 0.0 }
 0x3ab   : > { %v2825_v42 = vpop.f32.mrb[0].mxu0 }
 0x3ac   : > { %v1482_v45 = vpop.f32.mrb[1].mxu0  ;;  %v1522_v52 = vadd.f32 %v2825_v42, %v1368_v43  ;;  %v1861_v42 = vld [vmem:[#allocation17 + $0xf0] sm:$0xff]  ;;  %v1862_v43 = vld [vmem:[#allocation17 + $0xf8] sm:$0xff] }
 0x3ad   : > { %v1521_v48 = vadd.f32 %v1482_v45, %v1367_v40  ;;  %v1843_v40 = vld [vmem:[#allocation17 + $0x60] sm:$0xff]  ;;  %v1845_v45 = vld [vmem:[#allocation17 + $0x70] sm:$0xff] }
 0x3ae   : > { %v1537_v62 = vadd.f32 %v4178_v44, %v1522_v52  ;;  %v3017_v47 = vpack.c.bf16 %v1846_v46, %v1845_v45 }
 0x3af   : > { %v1536_v53 = vadd.f32 %v4178_v44, %v1521_v48  ;;  %v2828_v55 = vpop.f32.mrb[2].mxu0  ;;  %v1729_v48 = vld [vmem:[%s4473_s16] sm:$0x3] }
 0x3b0   : > { %v1492_v59 = vpop.f32.mrb[3].mxu0  ;;  %v1524_v14 = vadd.f32 %v2828_v55, %v1370_v0  ;;  %v1730_v49 = vadd.f32 1e-05, %v1729_v48 }
 0x3b1   : > { %1653 = vmatmul.mubr.f32.vlgmr.msra.gmra.mrb[0].mxu1 %v1536_v53  ;;  %v1523_v60 = vadd.f32 %v1492_v59, %v1369_v50  ;;  %v1578_v50 = vlaneseq  ;;  %v1576_v53 = vld [vmem:[%s4536_s5] sm:$0x3] }
 0x3b2   : > { %1658 = vmatprep.mubr.f32.mxu1 %v3584_v54  ;;  %v1539_v19 = vadd.f32 %v4178_v44, %v1524_v14  ;;  %3224 = vrsqrt.f32 %v1730_v49 }
 0x3b3   : > { %v2831_v63 = vpop.f32.mrb[4].mxu0  ;;  %v1538_v10 = vadd.f32 %v4178_v44, %v1523_v60  ;;  %v1579_v51 = vshrl.u32 %v1578_v50, 7 }
 0x3b4   : > { %v1502_v1 = vpop.f32.mrb[5].mxu0  ;;  %v1526_v25 = vadd.f32 %v2831_v63, %v1372_v20 }
 0x3b5   : > { %1659 = vmatmul.mubr.f32.gmra.mrb[2].mxu1 %v1537_v62  ;;  %v1525_v18 = vadd.f32 %v1502_v1, %v1371_v4  ;;  %v1580_v52 = vsub.s32 0, %v1579_v51  ;;  %v1584_v55 = vsub.s32 1, %v1579_v51  ;;  %v1759_v62 = vld [vmem:[%s4470_s13] sm:$0x3] }
 0x3b6   : > { %1664 = vmatprep.mubr.f32.mxu1 %v3584_v54  ;;  %v1541_v28 = vadd.f32 %v4178_v44, %v1526_v25 }
 0x3b7   : > { %v2834_v15 = vpop.f32.mrb[6].mxu0  ;;  %v1540_v22 = vadd.f32 %v4178_v44, %v1525_v18  ;;  %v4206_v57 = vrot.slane %v1576_v53, %v1580_v52  ;;  %v4208_v59 = vrot.slane %v1576_v53, %v1584_v55  ;;  %v4210_v60 = vrot.slane %v1701_v56, %v1580_v52 }
 0x3b8   : > { %v1512_v5 = vpop.f32.mrb[7].mxu0  ;;  %v1528_v9 = vadd.f32 %v2834_v15, %v1374_v8  ;;  %v4215_v63 = vrot.slane %v1701_v56, %v1584_v55  ;;  %v4227_v14 = vrot.slane %v1759_v62, %v1580_v52  ;;  %v4230_v17 = vrot.slane %v1759_v62, %v1584_v55 }
 0x3b9   : > { %1665 = vmatmul.mubr.f32.gmra.mrb[4].mxu1 %v1538_v10  ;;  %v1527_v27 = vadd.f32 %v1512_v5, %v1373_v24  ;;  %v1787_v10 = vld [vmem:[%s4471_s14] sm:$0x3] }
 0x3ba   : > { %1670 = vmatprep.mubr.f32.mxu1 %v3584_v54  ;;  %v1543_v29 = vadd.f32 %v4178_v44, %v1528_v9  ;;  %v4233_v18 = vrot.slane %v1787_v10, %v1580_v52 }
 0x3bb   : > { %v1542_v7 = vadd.f32 %v4178_v44, %v1527_v27  ;;  %v3015_v44 = vpack.c.bf16 %v1862_v43, %v1861_v42 }
 0x3bc   : > { %v3225_v58 = vpop.eup %3224 }
 0x3bd   : > { %1671 = vmatmul.mubr.f32.gmra.mrb[6].mxu1 %v1539_v19  ;;  %v4218_v1 = vrot.slane %v3225_v58, %v1580_v52  ;;  %v4224_v4 = vrot.slane %v3225_v58, %v1584_v55 }
 0x3be   : > { %1676 = vmatprep.mubr.f32.mxu1 %v3584_v54 }
 0x3c1   : > { %1677 = vmatmul.mubr.f32.gmra.mrb[8].mxu1 %v1540_v22  ;;  %v4238_v22 = vrot.slane %v1787_v10, %v1584_v55 }
 0x3c2   : > { %1682 = vmatprep.mubr.f32.mxu1 %v3584_v54 }
 0x3c5   : > { %1683 = vmatmul.mubr.f32.gmra.mrb[10].mxu1 %v1541_v28 }
 0x3c6   : > { %1688 = vmatprep.mubr.f32.mxu1 %v3584_v54 }
 0x3c9   : > { %1689 = vmatmul.mubr.f32.gmra.mrb[12].mxu1 %v1542_v7 }
 0x3ca   : > { %1694 = vmatprep.mubr.f32.mxu1 %v3584_v54  ;;  %v1844_v54 = vld [vmem:[#allocation17 + $0x68] sm:$0xff] }
 0x3cb   : > { %v3013_v41 = vpack.c.bf16 %v1844_v54, %v1843_v40 }
 0x3cd   : > { %1695 = vmatmul.mubr.f32.gmra.mrb[14].mxu1 %v1543_v29  ;;  %3014 = vmatpush3.bf16.msra.mxu0 %v3013_v41 }
 0x3ce   : > { %3016 = vmatprep.subr.bf16.mxu0 %v3015_v44 }
 0x3d1   : > { %3018 = vmatpush3.bf16.msra.mxu0 %v3017_v47 }
 0x484   : > { %v1654_v61 = vpop.f32.mrb[0].mxu1 }
 0x485   : > { %v1655_v0 = vadd.f32 %v1654_v61, %v4206_v57  ;;  %v1656_v2 = vpop.f32.mrb[1].mxu1 }
 0x486   : > { %v1657_v3 = vadd.f32 %v1656_v2, %v4208_v59 }
 0x487   : > { %v1713_v12 = vsub.f32 %v1655_v0, %v4210_v60 }
 0x488   : > { %v1714_v15 = vsub.f32 %v1657_v3, %v4215_v63  ;;  %v1660_v16 = vpop.f32.mrb[2].mxu1 }
 0x489   : > { %v1743_v5 = vmul.f32 %v4218_v1, %v1713_v12  ;;  %v1661_v6 = vadd.f32 %v1660_v16, %v4206_v57  ;;  %v1662_v19 = vpop.f32.mrb[3].mxu1 }
 0x48a   : > { %v1744_v20 = vmul.f32 %v4224_v4, %v1714_v15  ;;  %v1663_v21 = vadd.f32 %v1662_v19, %v4208_v59 }
 0x48b   : > { %v1771_v23 = vmul.f32 %v4227_v14, %v1743_v5  ;;  %v1715_v24 = vsub.f32 %v1661_v6, %v4210_v60 }
 0x48c   : > { %v1716_v25 = vsub.f32 %v1663_v21, %v4215_v63  ;;  %v1666_v26 = vpop.f32.mrb[4].mxu1  ;;  %v1772_v27 = vmul.f32 %v4230_v17, %v1744_v20 }
 0x48d   : > { %v1799_v28 = vadd.f32 %v4233_v18, %v1771_v23  ;;  %v1745_v8 = vmul.f32 %v4218_v1, %v1715_v24  ;;  %v1667_v7 = vadd.f32 %v1666_v26, %v4206_v57  ;;  %v1668_v9 = vpop.f32.mrb[5].mxu1 }
 0x48e   : > { %v1746_v29 = vmul.f32 %v4224_v4, %v1716_v25  ;;  %v1669_v11 = vadd.f32 %v1668_v9, %v4208_v59  ;;  %v1800_v13 = vadd.f32 %v4238_v22, %v1772_v27 }
 0x48f   : > { %v1717_v30 = vsub.f32 %v1667_v7, %v4210_v60  ;;  %v1773_v31 = vmul.f32 %v4227_v14, %v1745_v8  ;;  %v1815_v36 = vmax.f32 %v1799_v28, 0.0 }
 0x490   : > { %v1718_v32 = vsub.f32 %v1669_v11, %v4215_v63  ;;  %v1672_v33 = vpop.f32.mrb[6].mxu1  ;;  %v1816_v34 = vmax.f32 %v1800_v13, 0.0  ;;  %v1774_v35 = vmul.f32 %v4230_v17, %v1746_v29 }
 0x491   : > { %v1747_v37 = vmul.f32 %v4218_v1, %v1717_v30  ;;  %v1673_v38 = vadd.f32 %v1672_v33, %v4206_v57  ;;  %v1674_v39 = vpop.f32.mrb[7].mxu1  ;;  %v1801_v40 = vadd.f32 %v4233_v18, %v1773_v31 }
 0x492   : > { %v1748_v54 = vmul.f32 %v4224_v4, %v1718_v32  ;;  %v1675_v41 = vadd.f32 %v1674_v39, %v4208_v59  ;;  %1934 = vmatprep.mubr.f32.mxu0 %v1816_v34  ;;  %v1802_v42 = vadd.f32 %v4238_v22, %v1774_v35 }
 0x493   : > { %v1719_v43 = vsub.f32 %v1673_v38, %v4210_v60  ;;  %1935 = vmatmul.mubr.f32.vlgmr.msra.gmra.mrb[8].mxu0 %v1815_v36  ;;  %v1775_v44 = vmul.f32 %v4227_v14, %v1747_v37  ;;  %v1817_v52 = vmax.f32 %v1801_v40, 0.0 }
 0x494   : > { %v1720_v45 = vsub.f32 %v1675_v41, %v4215_v63  ;;  %v1678_v46 = vpop.f32.mrb[8].mxu1  ;;  %v1818_v47 = vmax.f32 %v1802_v42, 0.0  ;;  %v1776_v48 = vmul.f32 %v4230_v17, %v1748_v54 }
 0x495   : > { %v1749_v49 = vmul.f32 %v4218_v1, %v1719_v43  ;;  %v1679_v50 = vadd.f32 %v1678_v46, %v4206_v57  ;;  %v1680_v51 = vpop.f32.mrb[9].mxu1  ;;  %v1803_v53 = vadd.f32 %v4233_v18, %v1775_v44 }
 0x496   : > { %v1750_v55 = vmul.f32 %v4224_v4, %v1720_v45  ;;  %v1681_v56 = vadd.f32 %v1680_v51, %v4208_v59  ;;  %1939 = vmatprep.mubr.f32.mxu0 %v1818_v47  ;;  %v1804_v58 = vadd.f32 %v4238_v22, %v1776_v48 }
 0x497   : > { %v1721_v61 = vsub.f32 %v1679_v50, %v4210_v60  ;;  %1940 = vmatmul.mubr.f32.gmra.mrb[10].mxu0 %v1817_v52  ;;  %v1777_v62 = vmul.f32 %v4227_v14, %v1749_v49  ;;  %v1819_v5 = vmax.f32 %v1803_v53, 0.0 }
 0x498   : > { %v1722_v0 = vsub.f32 %v1681_v56, %v4215_v63  ;;  %v1684_v2 = vpop.f32.mrb[10].mxu1  ;;  %v1820_v10 = vmax.f32 %v1804_v58, 0.0  ;;  %v1778_v3 = vmul.f32 %v4230_v17, %v1750_v55 }
 0x499   : > { %v1751_v12 = vmul.f32 %v4218_v1, %v1721_v61  ;;  %v1685_v15 = vadd.f32 %v1684_v2, %v4206_v57  ;;  %v1686_v16 = vpop.f32.mrb[11].mxu1  ;;  %v1805_v6 = vadd.f32 %v4233_v18, %v1777_v62 }
 0x49a   : > { %v1752_v19 = vmul.f32 %v4224_v4, %v1722_v0  ;;  %v1687_v20 = vadd.f32 %v1686_v16, %v4208_v59  ;;  %1944 = vmatprep.mubr.f32.mxu0 %v1820_v10  ;;  %v1806_v21 = vadd.f32 %v4238_v22, %v1778_v3 }
 0x49b   : > { %v1723_v23 = vsub.f32 %v1685_v15, %v4210_v60  ;;  %1945 = vmatmul.mubr.f32.gmra.mrb[12].mxu0 %v1819_v5  ;;  %v1779_v24 = vmul.f32 %v4227_v14, %v1751_v12  ;;  %v1821_v29 = vmax.f32 %v1805_v6, 0.0 }
 0x49c   : > { %v1724_v25 = vsub.f32 %v1687_v20, %v4215_v63  ;;  %v1690_v26 = vpop.f32.mrb[12].mxu1  ;;  %v1822_v27 = vmax.f32 %v1806_v21, 0.0  ;;  %v1780_v28 = vmul.f32 %v4230_v17, %v1752_v19 }
 0x49d   : > { %v1753_v8 = vmul.f32 %v4218_v1, %v1723_v23  ;;  %v1691_v7 = vadd.f32 %v1690_v26, %v4206_v57  ;;  %v1692_v9 = vpop.f32.mrb[13].mxu1  ;;  %v1807_v11 = vadd.f32 %v4233_v18, %v1779_v24 }
 0x49e   : > { %v1754_v13 = vmul.f32 %v4224_v4, %v1724_v25  ;;  %v1693_v30 = vadd.f32 %v1692_v9, %v4208_v59  ;;  %1949 = vmatprep.mubr.f32.mxu0 %v1822_v27  ;;  %v1808_v31 = vadd.f32 %v4238_v22, %v1780_v28 }
 0x49f   : > { %v1725_v32 = vsub.f32 %v1691_v7, %v4210_v60  ;;  %1950 = vmatmul.mubr.f32.gmra.mrb[14].mxu0 %v1821_v29  ;;  %v1781_v33 = vmul.f32 %v4227_v14, %v1753_v8  ;;  %v1823_v54 = vmax.f32 %v1807_v11, 0.0 }
 0x4a0   : > { %v1726_v34 = vsub.f32 %v1693_v30, %v4215_v63  ;;  %v1696_v35 = vpop.f32.mrb[14].mxu1  ;;  %v1824_v36 = vmax.f32 %v1808_v31, 0.0  ;;  %v1782_v37 = vmul.f32 %v4230_v17, %v1754_v13 }
 0x4a1   : > { %v1755_v38 = vmul.f32 %v4218_v1, %v1725_v32  ;;  %v1697_v39 = vadd.f32 %v1696_v35, %v4206_v57  ;;  %v1698_v40 = vpop.f32.mrb[15].mxu1  ;;  %v1809_v41 = vadd.f32 %v4233_v18, %v1781_v33 }
 0x4a2   : > { %v1756_v42 = vmul.f32 %v4224_v4, %v1726_v34  ;;  %v1699_v43 = vadd.f32 %v1698_v40, %v4208_v59  ;;  %1954 = vmatprep.mubr.f32.mxu0 %v1824_v36  ;;  %v1810_v44 = vadd.f32 %v4238_v22, %v1782_v37 }
 0x4a3   : > { %v1727_v45 = vsub.f32 %v1697_v39, %v4210_v60  ;;  %1955 = vmatmul.mubr.f32.gmra.mrb[16].mxu0 %v1823_v54  ;;  %v1783_v46 = vmul.f32 %v4227_v14, %v1755_v38  ;;  %v1825_v50 = vmax.f32 %v1809_v41, 0.0 }
 0x4a4   : > { %v1728_v47 = vsub.f32 %v1699_v43, %v4215_v63  ;;  %v1826_v48 = vmax.f32 %v1810_v44, 0.0  ;;  %v1784_v57 = vmul.f32 %v4230_v17, %v1756_v42 }
 0x4a5   : > { %v1757_v49 = vmul.f32 %v4218_v1, %v1727_v45  ;;  %v1811_v51 = vadd.f32 %v4233_v18, %v1783_v46 }
 0x4a6   : > { %v1758_v59 = vmul.f32 %v4224_v4, %v1728_v47  ;;  %1959 = vmatprep.mubr.f32.mxu0 %v1826_v48  ;;  %v1812_v52 = vadd.f32 %v4238_v22, %v1784_v57 }
 0x4a7   : > { %1960 = vmatmul.mubr.f32.gmra.mrb[18].mxu0 %v1825_v50  ;;  %v1785_v60 = vmul.f32 %v4227_v14, %v1757_v49  ;;  %v1827_v63 = vmax.f32 %v1811_v51, 0.0  ;;  %v2623_v14 = vld [vmem:[%s4475_s18] ss:$0 sm:$0xff] }
 0x4a8   : > { %v1828_v53 = vmax.f32 %v1812_v52, 0.0  ;;  %v1786_v55 = vmul.f32 %v4230_v17, %v1758_v59 }
 0x4a9   : > { %v1813_v56 = vadd.f32 %v4233_v18, %v1785_v60 }
 0x4aa   : > { %1964 = vmatprep.mubr.f32.mxu0 %v1828_v53  ;;  %v1814_v1 = vadd.f32 %v4238_v22, %v1786_v55 }
 0x4ab   : > { %1965 = vmatmul.mubr.f32.gmra.mrb[20].mxu0 %v1827_v63  ;;  %v1829_v61 = vmax.f32 %v1813_v56, 0.0 }
 0x4ac   : > { %v1830_v58 = vmax.f32 %v1814_v1, 0.0 }
 0x4ae   : > { %1969 = vmatprep.mubr.f32.mxu0 %v1830_v58 }
 0x4af   : > { %1970 = vmatmul.mubr.f32.gmra.mrb[22].mxu0 %v1829_v61  ;;  %v2150_v61 = vld [vmem:[#allocation19] sm:$0xff] }
 0x566   : > { %v2707_v4 = vpop.f32.mrb[8].mxu0 }
 0x567   : > { %v2708_v62 = vpop.f32.mrb[9].mxu0 }
 0x568   : > { %v2709_v0 = vadd.f32 %v2708_v62, %v2707_v4  ;;  %v2151_v4 = vld [vmem:[#allocation19 + $0x8] sm:$0xff]  ;;  %v2286_v62 = vld [vmem:[#allocation20] sm:$0xff] }
 0x56a   : > { %v2710_v2 = vpop.f32.mrb[10].mxu0  ;;  %v1937_v17 = vadd.f32 %v2709_v0, %v2623_v14  ;;  %v2287_v0 = vld [vmem:[#allocation20 + $0x8] sm:$0xff] }
 0x56b   : > { %v2711_v10 = vpop.f32.mrb[11].mxu0 }
 0x56c   : > { %v2712_v3 = vadd.f32 %v2711_v10, %v2710_v2  ;;  %1975 = vadd.xlane.f32.xlu0 %v1937_v17 }
 0x56e   : > { %v2713_v18 = vpop.f32.mrb[12].mxu0  ;;  %v1942_v12 = vadd.f32 %v2712_v3, %v2623_v14  ;;  %v2152_v3 = vld [vmem:[#allocation19 + $0x10] sm:$0xff] }
 0x56f   : > { %v2714_v22 = vpop.f32.mrb[13].mxu0 }
 0x570   : > { %v2715_v15 = vadd.f32 %v2714_v22, %v2713_v18  ;;  %1977 = vadd.xlane.f32.xlu0 %v1942_v12  ;;  %v2153_v18 = vld [vmem:[#allocation19 + $0x18] sm:$0xff] }
 0x571   : > { %v3023_v22 = vpack.c.bf16 %v2153_v18, %v2152_v3 }
 0x572   : > { %v2716_v16 = vpop.f32.mrb[14].mxu0  ;;  %v1947_v5 = vadd.f32 %v2715_v15, %v2623_v14  ;;  %v2289_v15 = vld [vmem:[#allocation20 + $0x18] sm:$0xff] }
 0x573   : > { %v2717_v6 = vpop.f32.mrb[15].mxu0 }
 0x574   : > { %v2718_v19 = vadd.f32 %v2717_v6, %v2716_v16  ;;  %1979 = vadd.xlane.f32.xlu1 %v1947_v5  ;;  %v2155_v6 = vld [vmem:[#allocation19 + $0x28] sm:$0xff] }
 0x576   : > { %v2719_v20 = vpop.f32.mrb[16].mxu0  ;;  %v1952_v21 = vadd.f32 %v2718_v19, %v2623_v14  ;;  %v2290_v19 = vld [vmem:[#allocation20 + $0x20] sm:$0xff] }
 0x577   : > { %v2720_v23 = vpop.f32.mrb[17].mxu0 }
 0x578   : > { %v2721_v24 = vadd.f32 %v2720_v23, %v2719_v20  ;;  %1981 = vadd.xlane.f32.xlu1 %v1952_v21 }
 0x57a   : > { %v2722_v25 = vpop.f32.mrb[18].mxu0  ;;  %v1957_v26 = vadd.f32 %v2721_v24, %v2623_v14  ;;  %v2156_v24 = vld [vmem:[#allocation19 + $0x30] sm:$0xff] }
 0x57b   : > { %v2723_v27 = vpop.f32.mrb[19].mxu0 }
 0x57c   : > { %v2724_v28 = vadd.f32 %v2723_v27, %v2722_v25  ;;  %1983 = vadd.xlane.f32.xlu0 %v1957_v26  ;;  %v2157_v25 = vld [vmem:[#allocation19 + $0x38] sm:$0xff] }
 0x57d   : > { %v3031_v27 = vpack.c.bf16 %v2157_v25, %v2156_v24 }
 0x57e   : > { %v2725_v8 = vpop.f32.mrb[20].mxu0  ;;  %v1962_v7 = vadd.f32 %v2724_v28, %v2623_v14  ;;  %v2293_v28 = vld [vmem:[#allocation20 + $0x38] sm:$0xff] }
 0x57f   : > { %v2726_v9 = vpop.f32.mrb[21].mxu0 }
 0x580   : > { %v2727_v29 = vadd.f32 %v2726_v9, %v2725_v8  ;;  %1985 = vadd.xlane.f32.xlu1 %v1962_v7  ;;  %v2159_v9 = vld [vmem:[#allocation19 + $0x48] sm:$0xff] }
 0x582   : > { %v2728_v11 = vpop.f32.mrb[22].mxu0  ;;  %v1967_v13 = vadd.f32 %v2727_v29, %v2623_v14  ;;  %v2294_v29 = vld [vmem:[#allocation20 + $0x40] sm:$0xff] }
 0x583   : > { %v2729_v30 = vpop.f32.mrb[23].mxu0 }
 0x584   : > { %v2730_v31 = vadd.f32 %v2729_v30, %v2728_v11  ;;  %1987 = vadd.xlane.f32.xlu0 %v1967_v13 }
 0x586   : > { %v1972_v32 = vadd.f32 %v2730_v31, %v2623_v14  ;;  %v3019_v14 = vpack.c.bf16 %v2151_v4, %v2150_v61  ;;  %v2160_v31 = vld [vmem:[#allocation19 + $0x50] sm:$0xff] }
 0x588   : > { %1989 = vadd.xlane.f32.xlu1 %v1972_v32  ;;  %3020 = vmatprep.subr.bf16.mxu1 %v3019_v14 }
 0x589   : > { %3022 = vmatpush3.bf16.msra.mxu1 %v3019_v14 }
 0x58a   : > { %3024 = vmatprep.subr.bf16.mxu1 %v3023_v22 }
 0x58d   : > { %3026 = vmatpush3.bf16.msra.mxu1 %v3023_v22  ;;  %v4356_v22 = vld [vmem:[%s4537_s30] ss:$0 sm:$0xff] }
 0x5f9   : > { %v1976_v33 = vpop.xlane.xlu0 %1975 }
 0x5fa   : > { %v1992_v34 = vmul.f32 0.0078125, %v1976_v33  ;;  %v2296_v33 = vld [vmem:[#allocation20 + $0x50] sm:$0xff] }
 0x5fc   : > { %v4315_v35 = vsub.f32 %v1937_v17, %v1992_v34  ;;  %v3051_v17 = vpack.c.bf16 %v2287_v0, %v2286_v62 }
 0x5fd   : > { %v1978_v36 = vpop.xlane.xlu0 %1977 }
 0x5fe   : > { %v1993_v37 = vmul.f32 0.0078125, %v1978_v36  ;;  %v2008_v38 = vmul.f32 %v4315_v35, %v4315_v35  ;;  %3052 = vmatprep.subr.bf16.mxu0 %v3051_v17  ;;  %v2297_v36 = vld [vmem:[#allocation20 + $0x58] sm:$0xff] }
 0x5ff   : > { %3054 = vmatpush3.bf16.msra.mxu0 %v3051_v17 }
 0x600   : > { %v4319_v39 = vsub.f32 %v1942_v12, %v1993_v37  ;;  %2016 = vadd.xlane.f32.xlu0 %v2008_v38  ;;  %v2288_v12 = vld [vmem:[#allocation20 + $0x10] sm:$0xff]  ;;  %v3071_v37 = vpack.c.bf16 %v2297_v36, %v2296_v33  ;;  %v2162_v38 = vld [vmem:[#allocation19 + $0x60] sm:$0xff] }
 0x601   : > { %v1980_v40 = vpop.xlane.xlu1 %1979  ;;  %v3055_v16 = vpack.c.bf16 %v2289_v15, %v2288_v12 }
 0x602   : > { %v1994_v54 = vmul.f32 0.0078125, %v1980_v40  ;;  %v2009_v41 = vmul.f32 %v4319_v39, %v4319_v39  ;;  %v2163_v40 = vld [vmem:[#allocation19 + $0x68] sm:$0xff] }
 0x603   : > { %3056 = vmatprep.subr.bf16.mxu0 %v3055_v16 }
 0x604   : > { %v4323_v42 = vsub.f32 %v1947_v5, %v1994_v54  ;;  %2018 = vadd.xlane.f32.xlu1 %v2009_v41  ;;  %v2154_v5 = vld [vmem:[#allocation19 + $0x20] sm:$0xff]  ;;  %3058 = vmatpush3.bf16.msra.mxu0 %v3055_v16  ;;  %v3043_v41 = vpack.c.bf16 %v2163_v40, %v2162_v38 }
 0x605   : > { %v1982_v43 = vpop.xlane.xlu1 %1981  ;;  %v3027_v20 = vpack.c.bf16 %v2155_v6, %v2154_v5  ;;  %v2298_v54 = vld [vmem:[#allocation20 + $0x60] sm:$0xff] }
 0x606   : > { %v1995_v44 = vmul.f32 0.0078125, %v1982_v43  ;;  %v2010_v45 = vmul.f32 %v4323_v42, %v4323_v42  ;;  %v2299_v43 = vld [vmem:[#allocation20 + $0x68] sm:$0xff] }
 0x607   : > { %3028 = vmatprep.subr.bf16.mxu1 %v3027_v20 }
 0x608   : > { %v4327_v46 = vsub.f32 %v1952_v21, %v1995_v44  ;;  %2020 = vadd.xlane.f32.xlu0 %v2010_v45  ;;  %v2291_v21 = vld [vmem:[#allocation20 + $0x28] sm:$0xff]  ;;  %3030 = vmatpush3.bf16.msra.mxu1 %v3027_v20  ;;  %v2164_v44 = vld [vmem:[#allocation19 + $0x70] sm:$0xff]  ;;  %v2165_v45 = vld [vmem:[#allocation19 + $0x78] sm:$0xff] }
 0x609   : > { %v1984_v47 = vpop.xlane.xlu0 %1983  ;;  %v3059_v23 = vpack.c.bf16 %v2291_v21, %v2290_v19  ;;  %3032 = vmatprep.subr.bf16.mxu1 %v3031_v27 }
 0x60a   : > { %v1996_v48 = vmul.f32 0.0078125, %v1984_v47  ;;  %v2011_v57 = vmul.f32 %v4327_v46, %v4327_v46  ;;  %v3075_v47 = vpack.c.bf16 %v2299_v43, %v2298_v54 }
 0x60b   : > { %3060 = vmatprep.subr.bf16.mxu0 %v3059_v23 }
 0x60c   : > { %v4331_v49 = vsub.f32 %v1957_v26, %v1996_v48  ;;  %2022 = vadd.xlane.f32.xlu1 %v2011_v57  ;;  %v2292_v26 = vld [vmem:[#allocation20 + $0x30] sm:$0xff]  ;;  %3062 = vmatpush3.bf16.msra.mxu0 %v3059_v23  ;;  %v3047_v48 = vpack.c.bf16 %v2165_v45, %v2164_v44 }
 0x60d   : > { %v1986_v50 = vpop.xlane.xlu1 %1985  ;;  %v3063_v8 = vpack.c.bf16 %v2293_v28, %v2292_v26  ;;  %3034 = vmatpush3.bf16.msra.mxu1 %v3031_v27  ;;  %v2300_v57 = vld [vmem:[#allocation20 + $0x70] sm:$0xff] }
 0x60e   : > { %v1997_v51 = vmul.f32 0.0078125, %v1986_v50  ;;  %v2012_v59 = vmul.f32 %v4331_v49, %v4331_v49  ;;  %v2301_v50 = vld [vmem:[#allocation20 + $0x78] sm:$0xff] }
 0x60f   : > { %3064 = vmatprep.subr.bf16.mxu0 %v3063_v8 }
 0x610   : > { %v4335_v52 = vsub.f32 %v1962_v7, %v1997_v51  ;;  %2024 = vadd.xlane.f32.xlu0 %v2012_v59  ;;  %v2158_v7 = vld [vmem:[#allocation19 + $0x40] sm:$0xff]  ;;  %3066 = vmatpush3.bf16.msra.mxu0 %v3063_v8  ;;  %v3079_v51 = vpack.c.bf16 %v2301_v50, %v2300_v57 }
 0x611   : > { %v1988_v60 = vpop.xlane.xlu0 %1987  ;;  %v3035_v11 = vpack.c.bf16 %v2159_v9, %v2158_v7 }
 0x612   : > { %v1998_v53 = vmul.f32 0.0078125, %v1988_v60  ;;  %v2013_v55 = vmul.f32 %v4335_v52, %v4335_v52 }
 0x613   : > { %3036 = vmatprep.subr.bf16.mxu1 %v3035_v11 }
 0x614   : > { %v4339_v63 = vsub.f32 %v1967_v13, %v1998_v53  ;;  %2026 = vadd.xlane.f32.xlu1 %v2013_v55  ;;  %v2295_v13 = vld [vmem:[#allocation20 + $0x48] sm:$0xff]  ;;  %3038 = vmatpush3.bf16.msra.mxu1 %v3035_v11 }
 0x615   : > { %v1990_v56 = vpop.xlane.xlu1 %1989  ;;  %v3067_v30 = vpack.c.bf16 %v2295_v13, %v2294_v29 }
 0x616   : > { %v1999_v1 = vmul.f32 0.0078125, %v1990_v56  ;;  %v2014_v58 = vmul.f32 %v4339_v63, %v4339_v63 }
 0x617   : > { %3068 = vmatprep.subr.bf16.mxu0 %v3067_v30 }
 0x618   : > { %v4343_v2 = vsub.f32 %v1972_v32, %v1999_v1  ;;  %2028 = vadd.xlane.f32.xlu0 %v2014_v58  ;;  %v2161_v32 = vld [vmem:[#allocation19 + $0x58] sm:$0xff]  ;;  %3070 = vmatpush3.bf16.msra.mxu0 %v3067_v30 }
 0x619   : > { %v3039_v34 = vpack.c.bf16 %v2161_v32, %v2160_v31  ;;  %3072 = vmatprep.subr.bf16.mxu0 %v3071_v37 }
 0x61a   : > { %v2015_v10 = vmul.f32 %v4343_v2, %v4343_v2 }
 0x61b   : > { %3040 = vmatprep.subr.bf16.mxu1 %v3039_v34 }
 0x61c   : > { %2030 = vadd.xlane.f32.xlu1 %v2015_v10  ;;  %3042 = vmatpush3.bf16.msra.mxu1 %v3039_v34  ;;  %v4350_v10 = vld [vmem:[%s4476_s19] ss:$0 sm:$0xff] }
 0x61d   : > { %3074 = vmatpush3.bf16.msra.mxu0 %v3071_v37  ;;  %3044 = vmatprep.subr.bf16.mxu1 %v3043_v41 }
 0x61e   : > { %3076 = vmatprep.subr.bf16.mxu0 %v3075_v47 }
 0x620   : > { %3046 = vmatpush3.bf16.msra.mxu1 %v3043_v41 }
 0x621   : > { %3078 = vmatpush3.bf16.msra.mxu0 %v3075_v47  ;;  %3048 = vmatprep.subr.bf16.mxu1 %v3047_v48 }
 0x622   : > { %3080 = vmatprep.subr.bf16.mxu0 %v3079_v51 }
 0x624   : > { %3050 = vmatpush3.bf16.msra.mxu1 %v3047_v48 }
 0x625   : > { %3082 = vmatpush3.bf16.msra.mxu0 %v3079_v51 }
 0x68d   : > { %v2017_v59 = vpop.xlane.xlu0 %2016 }
 0x68e   : > { %v2032_v60 = vmul.f32 0.0078125, %v2017_v59 }
 0x690   : > { %v2040_v53 = vadd.f32 1e-05, %v2032_v60 }
 0x691   : > { %v2019_v55 = vpop.xlane.xlu1 %2018 }
 0x692   : > { %3226 = vrsqrt.f32 %v2040_v53  ;;  %v2033_v56 = vmul.f32 0.0078125, %v2019_v55 }
 0x694   : > { %v2041_v1 = vadd.f32 1e-05, %v2033_v56 }
 0x695   : > { %v2021_v58 = vpop.xlane.xlu0 %2020 }
 0x696   : > { %3228 = vrsqrt.f32 %v2041_v1  ;;  %v2034_v61 = vmul.f32 0.0078125, %v2021_v58 }
 0x698   : > { %v2042_v4 = vadd.f32 1e-05, %v2034_v61 }
 0x699   : > { %v2023_v62 = vpop.xlane.xlu1 %2022 }
 0x69a   : > { %3230 = vrsqrt.f32 %v2042_v4  ;;  %v2035_v14 = vmul.f32 0.0078125, %v2023_v62 }
 0x69c   : > { %v3227_v0 = vpop.eup %3226  ;;  %v2043_v17 = vadd.f32 1e-05, %v2035_v14 }
 0x69d   : > { %v2025_v3 = vpop.xlane.xlu0 %2024  ;;  %v2056_v18 = vmul.f32 %v3227_v0, %v4315_v35 }
 0x69e   : > { %3232 = vrsqrt.f32 %v2043_v17  ;;  %v2036_v12 = vmul.f32 0.0078125, %v2025_v3 }
 0x69f   : > { %v2071_v15 = vmul.f32 %v4350_v10, %v2056_v18 }
 0x6a0   : > { %v3229_v16 = vpop.eup %3228  ;;  %v2044_v5 = vadd.f32 1e-05, %v2036_v12 }
 0x6a1   : > { %v2057_v6 = vmul.f32 %v3229_v16, %v4319_v39  ;;  %v2027_v19 = vpop.xlane.xlu1 %2026  ;;  %v2086_v20 = vadd.f32 %v4356_v22, %v2071_v15 }
 0x6a2   : > { %3234 = vrsqrt.f32 %v2044_v5  ;;  %v2037_v21 = vmul.f32 0.0078125, %v2027_v19 }
 0x6a3   : > { %v2102_v23 = vmin.f32 %v2086_v20, 0.0  ;;  %v2072_v35 = vmul.f32 %v4350_v10, %v2057_v6  ;;  %vm2094_vm10 = vcmp.gt.f32.partialorder %v2086_v20, 0.0 }
 0x6a4   : > { %v3231_v24 = vpop.eup %3230  ;;  %v2045_v25 = vadd.f32 1e-05, %v2037_v21 }
 0x6a5   : > { %v2029_v26 = vpop.xlane.xlu0 %2028  ;;  %v2110_v27 = vmul.f32 1.442695, %v2102_v23  ;;  %v2087_v28 = vadd.f32 %v4356_v22, %v2072_v35  ;;  %v2058_v8 = vmul.f32 %v3231_v24, %v4323_v42 }
 0x6a6   : > { %3236 = vrsqrt.f32 %v2045_v25  ;;  %v2038_v7 = vmul.f32 0.0078125, %v2029_v26 }
 0x6a7   : > { %3238 = vpow2.f32 %v2110_v27  ;;  %v2103_v39 = vmin.f32 %v2087_v28, 0.0  ;;  %v2073_v9 = vmul.f32 %v4350_v10, %v2058_v8  ;;  %vm2095_vm11 = vcmp.gt.f32.partialorder %v2087_v28, 0.0 }
 0x6a8   : > { %v3233_v29 = vpop.eup %3232  ;;  %v2046_v11 = vadd.f32 1e-05, %v2038_v7 }
 0x6a9   : > { %v2031_v13 = vpop.xlane.xlu1 %2030  ;;  %v2112_v30 = vmul.f32 1.442695, %v2103_v39  ;;  %v2088_v31 = vadd.f32 %v4356_v22, %v2073_v9  ;;  %v2059_v32 = vmul.f32 %v3233_v29, %v4327_v46  ;;  %v2634_v39 = vld [vmem:[%s4480_s23] ss:$0 sm:$0xff] }
 0x6aa   : > { %3240 = vrsqrt.f32 %v2046_v11  ;;  %v2039_v33 = vmul.f32 0.0078125, %v2031_v13 }
 0x6ab   : > { %3242 = vpow2.f32 %v2112_v30  ;;  %v2104_v34 = vmin.f32 %v2088_v31, 0.0  ;;  %v2074_v42 = vmul.f32 %v4350_v10, %v2059_v32  ;;  %vm2096_vm12 = vcmp.gt.f32.partialorder %v2088_v31, 0.0 }
 0x6ac   : > { %v3235_v36 = vpop.eup %3234  ;;  %v2047_v37 = vadd.f32 1e-05, %v2039_v33 }
 0x6ad   : > { %v2114_v38 = vmul.f32 1.442695, %v2104_v34  ;;  %v2089_v40 = vadd.f32 %v4356_v22, %v2074_v42  ;;  %v2060_v54 = vmul.f32 %v3235_v36, %v4331_v49 }
 0x6ae   : > { %3244 = vrsqrt.f32 %v2047_v37 }
 0x6af   : > { %3246 = vpow2.f32 %v2114_v38  ;;  %v2105_v41 = vmin.f32 %v2089_v40, 0.0  ;;  %v2075_v43 = vmul.f32 %v4350_v10, %v2060_v54  ;;  %vm2097_vm13 = vcmp.gt.f32.partialorder %v2089_v40, 0.0 }
 0x6b0   : > { %v3237_v44 = vpop.eup %3236 }
 0x6b1   : > { %v3239_v46 = vpop.eup %3238  ;;  %v2116_v45 = vmul.f32 1.442695, %v2105_v41  ;;  %v2090_v47 = vadd.f32 %v4356_v22, %v2075_v43  ;;  %v2061_v48 = vmul.f32 %v3237_v44, %v4335_v52 }
 0x6b2   : > { %v2626_v57 = vadd.f32 -1.0, %v3239_v46 }
 0x6b3   : > { %3248 = vpow2.f32 %v2116_v45  ;;  %v2106_v50 = vmin.f32 %v2090_v47, 0.0  ;;  %v2076_v51 = vmul.f32 %v4350_v10, %v2061_v48  ;;  %vm2098_vm14 = vcmp.gt.f32.partialorder %v2090_v47, 0.0 }
 0x6b4   : > { %v3241_v59 = vpop.eup %3240  ;;  %v2134_v49 = vsel %vm2094_vm10, %v2086_v20, %v2626_v57 }
 0x6b5   : > { %v3243_v60 = vpop.eup %3242  ;;  %2142 = vst [vmem:[#allocation22] sm:$0xff] %v2134_v49  ;;  %2867 = vmatprep.mubr.f32.mxu1 %v2134_v49  ;;  %2911 = vmatprep.mubr.f32.mxu0 %v2134_v49  ;;  %v2118_v53 = vmul.f32 1.442695, %v2106_v50  ;;  %v2091_v55 = vadd.f32 %v4356_v22, %v2076_v51  ;;  %v2062_v56 = vmul.f32 %v3241_v59, %v4339_v63 }
 0x6b6   : > { %v2627_v1 = vadd.f32 -1.0, %v3243_v60 }
 0x6b7   : > { %3250 = vpow2.f32 %v2118_v53  ;;  %v2107_v52 = vmin.f32 %v2091_v55, 0.0  ;;  %v2077_v58 = vmul.f32 %v4350_v10, %v2062_v56  ;;  %vm2099_vm15 = vcmp.gt.f32.partialorder %v2091_v55, 0.0 }
 0x6b8   : > { %v3245_v61 = vpop.eup %3244  ;;  %v2135_v4 = vsel %vm2095_vm11, %v2087_v28, %v2627_v1 }
 0x6b9   : > { %v3247_v62 = vpop.eup %3246  ;;  %2143 = vst [vmem:[#allocation22 + $0x8] sm:$0xff] %v2135_v4  ;;  %2868 = vmatmul.mubr.f32.vlgmr.msra.gmra.mrb[16].mxu1 %v2135_v4  ;;  %2912 = vmatmul.mubr.f32.vlgmr.msra.gmra.mrb[24].mxu0 %v2135_v4  ;;  %v2120_v14 = vmul.f32 1.442695, %v2107_v52  ;;  %v2092_v0 = vadd.f32 %v4356_v22, %v2077_v58  ;;  %v2063_v17 = vmul.f32 %v3245_v61, %v4343_v2 }
 0x6ba   : > { %v2628_v3 = vadd.f32 -1.0, %v3247_v62 }
 0x6bb   : > { %3252 = vpow2.f32 %v2120_v14  ;;  %v2108_v63 = vmin.f32 %v2092_v0, 0.0  ;;  %v2078_v18 = vmul.f32 %v4350_v10, %v2063_v17  ;;  %vm2100_vm0 = vcmp.gt.f32.partialorder %v2092_v0, 0.0 }
 0x6bc   : > { %v2136_v12 = vsel %vm2096_vm12, %v2088_v31, %v2628_v3 }
 0x6bd   : > { %v3249_v15 = vpop.eup %3248  ;;  %2144 = vst [vmem:[#allocation22 + $0x10] sm:$0xff] %v2136_v12  ;;  %2870 = vmatprep.mubr.f32.mxu1 %v2136_v12  ;;  %2914 = vmatprep.mubr.f32.mxu0 %v2136_v12  ;;  %v2122_v16 = vmul.f32 1.442695, %v2108_v63  ;;  %v2093_v5 = vadd.f32 %v4356_v22, %v2078_v18 }
 0x6be   : > { %v2629_v6 = vadd.f32 -1.0, %v3249_v15 }
 0x6bf   : > { %3254 = vpow2.f32 %v2122_v16  ;;  %v2109_v19 = vmin.f32 %v2093_v5, 0.0  ;;  %vm2101_vm1 = vcmp.gt.f32.partialorder %v2093_v5, 0.0 }
 0x6c0   : > { %v2137_v20 = vsel %vm2097_vm13, %v2089_v40, %v2629_v6 }
 0x6c1   : > { %v3251_v2 = vpop.eup %3250  ;;  %2145 = vst [vmem:[#allocation22 + $0x18] sm:$0xff] %v2137_v20  ;;  %2871 = vmatmul.mubr.f32.gmra.mrb[18].mxu1 %v2137_v20  ;;  %2915 = vmatmul.mubr.f32.gmra.mrb[26].mxu0 %v2137_v20  ;;  %v2124_v21 = vmul.f32 1.442695, %v2109_v19 }
 0x6c2   : > { %v2630_v23 = vadd.f32 -1.0, %v3251_v2 }
 0x6c3   : > { %3256 = vpow2.f32 %v2124_v21 }
 0x6c4   : > { %v2138_v10 = vsel %vm2098_vm14, %v2090_v47, %v2630_v23 }
 0x6c5   : > { %v3253_v35 = vpop.eup %3252  ;;  %2146 = vst [vmem:[#allocation22 + $0x20] sm:$0xff] %v2138_v10  ;;  %2873 = vmatprep.mubr.f32.mxu1 %v2138_v10  ;;  %2917 = vmatprep.mubr.f32.mxu0 %v2138_v10 }
 0x6c6   : > { %v2631_v24 = vadd.f32 -1.0, %v3253_v35 }
 0x6c8   : > { %v2139_v22 = vsel %vm2099_vm15, %v2091_v55, %v2631_v24 }
 0x6c9   : > { %v3255_v25 = vpop.eup %3254  ;;  %2147 = vst [vmem:[#allocation22 + $0x28] sm:$0xff] %v2139_v22  ;;  %2874 = vmatmul.mubr.f32.gmra.mrb[20].mxu1 %v2139_v22  ;;  %2918 = vmatmul.mubr.f32.gmra.mrb[28].mxu0 %v2139_v22 }
 0x6ca   : > { %v2632_v26 = vadd.f32 -1.0, %v3255_v25 }
 0x6cc   : > { %v2140_v27 = vsel %vm2100_vm0, %v2092_v0, %v2632_v26 }
 0x6cd   : > { %v3257_v28 = vpop.eup %3256  ;;  %2148 = vst [vmem:[#allocation22 + $0x30] sm:$0xff] %v2140_v27  ;;  %2876 = vmatprep.mubr.f32.mxu1 %v2140_v27  ;;  %2920 = vmatprep.mubr.f32.mxu0 %v2140_v27 }
 0x6ce   : > { %v2633_v8 = vadd.f32 -1.0, %v3257_v28 }
 0x6d0   : > { %v2141_v7 = vsel %vm2101_vm1, %v2093_v5, %v2633_v8 }
 0x6d1   : > { %2149 = vst [vmem:[#allocation22 + $0x38] sm:$0xff] %v2141_v7  ;;  %2877 = vmatmul.mubr.f32.gmra.mrb[22].mxu1 %v2141_v7  ;;  %2921 = vmatmul.mubr.f32.gmra.mrb[30].mxu0 %v2141_v7 }
 0x78c   : > { %v2869_v9 = vpop.f32.mrb[16].mxu1  ;;  %v2913_v29 = vpop.f32.mrb[24].mxu0 }
 0x78d   : > { %v2245_v11 = vadd.f32 %v2869_v9, %v2634_v39  ;;  %2408 = vst [vmem:[#allocation25 + $0x8] sm:$0xff] %v2913_v29  ;;  %v2239_v13 = vpop.f32.mrb[17].mxu1  ;;  %v2368_v30 = vpop.f32.mrb[25].mxu0 }
 0x78e   : > { %v2240_v31 = vadd.f32 %v2634_v39, %v2239_v13  ;;  %2407 = vst [vmem:[#allocation25] sm:$0xff] %v2368_v30 }
 0x78f   : > { %2279 = vst [vmem:[#allocation23 + $0x8] sm:$0xff] %v2245_v11 }
 0x790   : > { %2278 = vst [vmem:[#allocation23] sm:$0xff] %v2240_v31 }
 0x794   : > { %v2872_v32 = vpop.f32.mrb[18].mxu1  ;;  %v2916_v33 = vpop.f32.mrb[26].mxu0 }
 0x795   : > { %v2255_v34 = vadd.f32 %v2872_v32, %v2634_v39  ;;  %2410 = vst [vmem:[#allocation25 + $0x18] sm:$0xff] %v2916_v33  ;;  %v2249_v42 = vpop.f32.mrb[19].mxu1  ;;  %v2378_v36 = vpop.f32.mrb[27].mxu0 }
 0x796   : > { %v2250_v37 = vadd.f32 %v2634_v39, %v2249_v42  ;;  %2409 = vst [vmem:[#allocation25 + $0x10] sm:$0xff] %v2378_v36 }
 0x797   : > { %2281 = vst [vmem:[#allocation23 + $0x18] sm:$0xff] %v2255_v34 }
 0x798   : > { %2280 = vst [vmem:[#allocation23 + $0x10] sm:$0xff] %v2250_v37 }
 0x79c   : > { %v2875_v38 = vpop.f32.mrb[20].mxu1  ;;  %v2919_v40 = vpop.f32.mrb[28].mxu0 }
 0x79d   : > { %v2265_v54 = vadd.f32 %v2875_v38, %v2634_v39  ;;  %2412 = vst [vmem:[#allocation25 + $0x28] sm:$0xff] %v2919_v40  ;;  %v2259_v41 = vpop.f32.mrb[21].mxu1  ;;  %v2388_v43 = vpop.f32.mrb[29].mxu0 }
 0x79e   : > { %v2260_v44 = vadd.f32 %v2634_v39, %v2259_v41  ;;  %2411 = vst [vmem:[#allocation25 + $0x20] sm:$0xff] %v2388_v43 }
 0x79f   : > { %2283 = vst [vmem:[#allocation23 + $0x28] sm:$0xff] %v2265_v54 }
 0x7a0   : > { %2282 = vst [vmem:[#allocation23 + $0x20] sm:$0xff] %v2260_v44 }
 0x7a4   : > { %v2878_v46 = vpop.f32.mrb[22].mxu1  ;;  %v2922_v45 = vpop.f32.mrb[30].mxu0 }
 0x7a5   : > { %v2275_v47 = vadd.f32 %v2878_v46, %v2634_v39  ;;  %2414 = vst [vmem:[#allocation25 + $0x38] sm:$0xff] %v2922_v45  ;;  %v2269_v48 = vpop.f32.mrb[23].mxu1  ;;  %v2398_v57 = vpop.f32.mrb[31].mxu0 }
 0x7a6   : > { %v2270_v50 = vadd.f32 %v2634_v39, %v2269_v48  ;;  %2413 = vst [vmem:[#allocation25 + $0x30] sm:$0xff] %v2398_v57 }
 0x7a7   : > { %2285 = vst [vmem:[#allocation23 + $0x38] sm:$0xff] %v2275_v47 }
 0x7a8   : > { %2284 = vst [vmem:[#allocation23 + $0x30] sm:$0xff] %v2270_v50 }
 0x7a9 PF: > { %p3158_p13 = scmp.eq.s32.totalorder %s3740_s4, 1  ;;  %s3585_s5 = smov [#allocation23]  }
 0x7aa   : > { %s2434_s12 = sshll.u32 %s3585_s5, 4  ;;  %s3586_s29 = smov [#allocation22]   ;;  %s2435_s12 = int_to_ptr.vmem [resolvable:$true] %s2434_s12 }
 0x7ab   : > { %s2421_s0 = sshll.u32 %s3586_s29, 4  ;;  %s3450_s9 = scalar_lea.vmem %s2435_s12, 1024  ;;  %s2422_s0 = int_to_ptr.vmem [resolvable:$true] %s2421_s0 }
 0x7ac   : > { %p3451_p4 = scmp.ne.s32.totalorder %s2435_s12, %s3450_s9  ;;  %p3457_p10 = scmp.lt.s32.totalorder %s2435_s12, %s2435_s12 }
 0x7ad   : > { %p3458_p11 = scmp.lt.s32.totalorder %s3450_s9, %s3450_s9 }
 0x7ae   : > { %p3452_p0 = pnand %p3451_p4, %p3158_p13 }
 0x7af   : > { %p3459_p2 = por %p3458_p11, %p3457_p10 }
 0x7b0   : > { %p3453_p9 = pneg %p3452_p0 }
 0x7b2   : > { %p3460_p1 = pnand %p3459_p2, %p3453_p9 }
 0x7b4   : > { %3463 = shalt.err (!%p3460_p1)
}
 0x7b5   : > { %s3464_s26 = scalar_lea.hbm %s4482_s25, 1024 }
 0x7b6   : > { %p3465_p3 = scmp.ne.s32.totalorder %s4482_s25, %s3464_s26  ;;  %p3470_p6 = scmp.lt.u32.totalorder %s3464_s26, %s4482_s25 }
 0x7b8   : > { %p3466_p5 = pnand %p3465_p3, %p3158_p13 }
 0x7ba   : > { %p3467_p12 = pneg %p3466_p5 }
 0x7bc   : > { %p3472_p7 = pnand %p3470_p6, %p3467_p12 }
 0x7be   : > { %3475 = shalt.err (!%p3472_p7)
}
 0x7bf   : > { %s3587_s28 = smov 128   ;;  %s3588_s30 = smov 8  }
 0x7c0   : > { %3118 = dma.vmem_to_hbm [thread:$0]  (%p3158_p13), %s2435_s12, 1024, %s4482_s25, [#allocation24], %s3587_s28, %s3587_s28, %s3588_s30  }
 0x7c1   : > { %s3476_s5 = scalar_lea.vmem %s2422_s0, 1024  ;;  %p3483_p9 = scmp.lt.s32.totalorder %s2422_s0, %s2422_s0 }
 0x7c2   : > { %p3477_p8 = scmp.ne.s32.totalorder %s2422_s0, %s3476_s5  ;;  %p3484_p10 = scmp.lt.s32.totalorder %s3476_s5, %s3476_s5 }
 0x7c4   : > { %p3478_p4 = pnand %p3477_p8, %p3158_p13  ;;  %p3485_p11 = por %p3484_p10, %p3483_p9 }
 0x7c6   : > { %p3479_p0 = pneg %p3478_p4 }
 0x7c8   : > { %p3486_p2 = pnand %p3485_p11, %p3479_p0 }
 0x7ca   : > { %3489 = shalt.err (!%p3486_p2)
}
 0x7cb   : > { %s4538_s11 = sld [smem:[#allocation46_spill]] }
 0x7d1   : > { %s3490_s1 = scalar_lea.hbm %s4538_s11, 1024 }
 0x7d2   : > { %p3491_p1 = scmp.ne.s32.totalorder %s4538_s11, %s3490_s1  ;;  %p3496_p12 = scmp.lt.u32.totalorder %s3490_s1, %s4538_s11 }
 0x7d4   : > { %p3492_p3 = pnand %p3491_p1, %p3158_p13 }
 0x7d6   : > { %p3493_p5 = pneg %p3492_p3 }
 0x7d8   : > { %p3498_p6 = pnand %p3496_p12, %p3493_p5 }
 0x7da   : > { %3501 = shalt.err (!%p3498_p6)
}
 0x7db   : > { %3116 = dma.vmem_to_hbm [thread:$0]  (%p3158_p13), %s2422_s0, 1024, %s4538_s11, [#allocation13], %s3587_s28, %s3587_s28, %s3588_s30  }
 0x7dc   : > { %s3589_s6 = smov [#allocation25]  }
 0x7dd   : > { %s2447_s7 = sshll.u32 %s3589_s6, 4  ;;  %s2448_s7 = int_to_ptr.vmem [resolvable:$true] %s2447_s7 }
 0x7de   : > { %s3502_s5 = scalar_lea.vmem %s2448_s7, 1024  ;;  %p3509_p0 = scmp.lt.s32.totalorder %s2448_s7, %s2448_s7 }
 0x7df   : > { %p3503_p7 = scmp.ne.s32.totalorder %s2448_s7, %s3502_s5  ;;  %p3510_p9 = scmp.lt.s32.totalorder %s3502_s5, %s3502_s5 }
 0x7e1   : > { %p3504_p8 = pnand %p3503_p7, %p3158_p13  ;;  %p3511_p10 = por %p3510_p9, %p3509_p0 }
 0x7e3   : > { %p3505_p4 = pneg %p3504_p8 }
 0x7e5   : > { %p3512_p11 = pnand %p3511_p10, %p3505_p4 }
 0x7e7   : > { %3515 = shalt.err (!%p3512_p11)
}
 0x7e8   : > { %s4539_s1 = sld [smem:[#allocation47_spill]] }
 0x7ee   : > { %s3516_s26 = scalar_lea.hbm %s4539_s1, 1024 }
 0x7ef   : > { %p3517_p2 = scmp.ne.s32.totalorder %s4539_s1, %s3516_s26  ;;  %p3522_p5 = scmp.lt.u32.totalorder %s3516_s26, %s4539_s1 }
 0x7f1   : > { %p3518_p1 = pnand %p3517_p2, %p3158_p13 }
 0x7f3   : > { %p3519_p3 = pneg %p3518_p1 }
 0x7f5   : > { %p3524_p12 = pnand %p3522_p5, %p3519_p3 }
 0x7f7   : > { %3527 = shalt.err (!%p3524_p12)
}
 0x7f8   : > { %3120 = dma.vmem_to_hbm [thread:$0]  (%p3158_p13), %s2448_s7, 1024, %s4539_s1, [#allocation24], %s3587_s28, %s3587_s28, %s3588_s30  }
 0x7f9   : > { %3555 = dma.done.wait (%p3158_p13), [#allocation13], 1024  }
 0x7fa   : > { %3557 = vsyncadd (%p3158_p13), [#allocation13], 4294966272 }
 0x7fb   : > { %3559 = dma.done.wait (%p3158_p13), [#allocation24], 2048  }
 0x7fc   : > { %3561 = vsyncadd (%p3158_p13), [#allocation24], 4294965248 }
 0x7fd PF: > { %s4540_s6 = sld [smem:[#allocation33_spill]] }
 0x803   : > { %s54_s20 = sadd.s32 1, %s4540_s6  }
 0x804   : > { %p51_p6 = scmp.ge.s32.totalorder %s54_s20, 4  }
 0x806   :  { %53 = sbr.rel (!%p51_p6) target bundleno = 44 (0x2c), region = 211 }
 0x80d   :  { %2471 = vsyncpa [#allocation12], 1 }
 0x80e   :  { %2473 = vsyncpa [#allocation12 + $0x1], 1 }
 0x80f   :  { %2474 = vsyncpa [#allocation15], 1 }
 0x810   :  { %2475 = vsyncpa [#allocation18], 1 }
 0x811   :  { %2476 = vsyncpa [#allocation21], 1 }
 0x812   :  { %2477 = vsyncpa [#allocation13], 1 }
 0x813   :  { %2479 = vsyncpa [#allocation13 + $0x1], 1 }
 0x814   :  { %2480 = vsyncpa [#allocation24], 1 }

</bundles_post_ra>
